<compile_context>
chip_gen: v7x
topology: tpu7x:2x2x1
jax: 0.10.0
libtpu: 0.0.40
codegen_flags: <defaults>
</compile_context>

<pallas_src>
import functools

import jax
import jax.numpy as jnp
import numpy as np
from jax import lax
from jax.experimental import pallas as pl
from jax.experimental.pallas import tpu as pltpu


def _vmem_limit_bytes(buffer_bytes):
    """Scoped-VMEM limit from actual buffer sizes: 2x (double buffering) plus
    headroom, clamped below physical VMEM (v7x has 64 MiB per TC)."""
    return int(min(100 << 20, 2 * buffer_bytes + (16 << 20)))


# ----------------------------------------------------------------------------
# Kernel 1: encoder LSTM -> decoder LSTM.  Gate order matches PyTorch: i,f,g,o.
# Emits the decoder hidden-state slab (Td*Bp, H) in bf16; encoder per-step
# outputs are discarded by the model and never materialized.
# ----------------------------------------------------------------------------
def _recurrence_kernel(enc_x_ref, dec_x_ref,
                       enc_wih_ref, enc_whh_ref,
                       dec_wih_ref, dec_whh_ref,
                       dec_h_ref,
                       enc_xg_scr, dec_xg_scr,
                       *, Bp, H, Te, Td, unroll):
    # Decoder input projection FIRST, into its own slab: no data dependence on
    # the encoder scan, so the MXU push overlaps the latency-bound recurrence
    # (the old shared-slab version forced it to wait for the whole encoder).
    dec_xg_scr[...] = jnp.dot(dec_x_ref[...], dec_wih_ref[...],
                              preferred_element_type=jnp.float32)
    enc_xg_scr[...] = jnp.dot(enc_x_ref[...], enc_wih_ref[...],
                              preferred_element_type=jnp.float32)

    def run_lstm(xg_scr, whh_ref, h0, c0, T, out_ref=None):
        w_hh = whh_ref[...]                       # (H, 4H) bf16, loaded once

        def step(t, carry):
            h, c = carry                          # vreg-resident state
            row = pl.multiple_of(t * Bp, Bp)      # sublane-aligned offset
            g = xg_scr[pl.ds(row, Bp), :] + jnp.dot(
                h.astype(w_hh.dtype), w_hh, preferred_element_type=jnp.float32)
            # Full-width activations on (Bp, 4H), then slice: 2 full-vreg EUP
            # ops (+1 for tanh(c)) instead of 4 narrow H-wide ones.
            sg = jax.nn.sigmoid(g)
            tg = jnp.tanh(g)
            i_g = sg[:, 0 * H:1 * H]
            f_g = sg[:, 1 * H:2 * H]
            g_g = tg[:, 2 * H:3 * H]
            o_g = sg[:, 3 * H:4 * H]
            c_new = f_g * c + i_g * g_g
            h_new = o_g * jnp.tanh(c_new)
            if out_ref is not None:
                out_ref[pl.ds(row, Bp), :] = h_new.astype(out_ref.dtype)
            return (h_new, c_new)

        # Capped unroll: scheduler visibility for MXU/EUP overlap without
        # exploding program size when T is large.
        return lax.fori_loop(0, T, step, (h0, c0), unroll=unroll)

    zeros = jnp.zeros((Bp, H), jnp.float32)       # matches PyTorch init_state
    h_enc, c_enc = run_lstm(enc_xg_scr, enc_whh_ref, zeros, zeros, Te)
    run_lstm(dec_xg_scr, dec_whh_ref, h_enc, c_enc, Td, out_ref=dec_h_ref)


# ----------------------------------------------------------------------------
# Kernel 2: Linear + LogSoftmax epilogue.
# Grid = (row blocks [parallel], vocab chunks [arbitrary]).  lin_w is streamed
# chunk by chunk; the (Bp, Vp) out block stays VMEM-resident per row block and
# is normalized in place with an online max/logsumexp on the last chunk.
# ----------------------------------------------------------------------------
def _epilogue_kernel(h_ref, w_ref, b_ref, out_ref, m_scr, l_scr, *, Vt):
    v = pl.program_id(1)

    @pl.when(v == 0)
    def _():
        m_scr[...] = jnp.full_like(m_scr, -jnp.inf)
        l_scr[...] = jnp.zeros_like(l_scr)

    logits = jnp.dot(h_ref[...], w_ref[...],
                     preferred_element_type=jnp.float32) + b_ref[...]

    # Online logsumexp accumulation across vocab chunks.
    m_prev = m_scr[...]
    m_new = jnp.maximum(m_prev, jnp.max(logits, axis=-1, keepdims=True))
    l_scr[...] = (l_scr[...] * jnp.exp(m_prev - m_new)
                  + jnp.sum(jnp.exp(logits - m_new), axis=-1, keepdims=True))
    m_scr[...] = m_new

    col = pl.multiple_of(v * Vt, Vt)
    out_ref[:, pl.ds(col, Vt)] = logits.astype(out_ref.dtype)

    @pl.when(v == pl.num_programs(1) - 1)
    def _():
        lse = m_scr[...] + jnp.log(l_scr[...])
        out_ref[...] = (out_ref[...].astype(jnp.float32) - lse).astype(
            out_ref.dtype)


# ----------------------------------------------------------------------------
# Wrapper: embedding gathers (tiny tables -> XLA glue), padding/layout
# plumbing, and the two pallas_calls.
# ----------------------------------------------------------------------------
def seq2seq_forward(params, encoder_inputs, decoder_inputs,
                    batch_size, hidden_size, out_dtype=jnp.float32):
    enc_emb = jnp.take(params["enc_embedding"], encoder_inputs, axis=0)  # (Te,B,D)
    dec_emb = jnp.take(params["dec_embedding"], decoder_inputs, axis=0)  # (Td,B,D)

    Te, B, D = enc_emb.shape
    Td = dec_emb.shape[0]
    H = hidden_size
    V = params["linear_w"].shape[-1]
    assert D == H, "module requires input_size == hidden_size"

    Bp = max(8, -(-B // 8) * 8)          # batch padded to sublane multiple
    Vp = -(-V // 128) * 128              # lane-dense vocab
    Vt = min(Vp, 512)                    # vocab chunk streamed per grid step
    Vp = -(-Vp // Vt) * Vt               # Vp multiple of the chunk size

    def prep_x(x):                       # (T, B, D) f32 -> (T*Bp, D) bf16
        xp = jnp.zeros((x.shape[0], Bp, D), x.dtype).at[:, :B, :].set(x)
        return xp.reshape(x.shape[0] * Bp, D).astype(jnp.bfloat16)

    enc_x = prep_x(enc_emb)
    dec_x = prep_x(dec_emb)

    # bf16 MXU operands; accumulation stays f32 inside the kernels.
    enc_wih = params["enc_w_ih"].astype(jnp.bfloat16)
    enc_whh = params["enc_w_hh"].astype(jnp.bfloat16)
    dec_wih = params["dec_w_ih"].astype(jnp.bfloat16)
    dec_whh = params["dec_w_hh"].astype(jnp.bfloat16)

    lin_w = jnp.zeros((H, Vp), jnp.float32).at[:, :V].set(
        params["linear_w"]).astype(jnp.bfloat16)
    # Padded vocab columns get a huge negative bias so they vanish in softmax.
    lin_b = jnp.full((1, Vp), -1e9, jnp.float32).at[:, :V].set(
        params["linear_b"])

    unroll = min(8, max(Te, Td))

    # ------------------------- recurrence kernel -------------------------
    rec_bytes = ((enc_x.size + dec_x.size) * 2
                 + (enc_wih.size + enc_whh.size
                    + dec_wih.size + dec_whh.size) * 2
                 + Td * Bp * H * 2                    # dec_h output (bf16)
                 + (Te + Td) * Bp * 4 * H * 4)        # xg scratch slabs (f32)

    dec_h = pl.pallas_call(
        functools.partial(_recurrence_kernel,
                          Bp=Bp, H=H, Te=Te, Td=Td, unroll=unroll),
        grid_spec=pltpu.PrefetchScalarGridSpec(
            num_scalar_prefetch=0,
            grid=(1,),
            in_specs=[
                pl.BlockSpec((Te * Bp, D), lambda i: (0, 0)),
                pl.BlockSpec((Td * Bp, D), lambda i: (0, 0)),
                pl.BlockSpec((D, 4 * H), lambda i: (0, 0)),
                pl.BlockSpec((H, 4 * H), lambda i: (0, 0)),
                pl.BlockSpec((H, 4 * H), lambda i: (0, 0)),   # dec in size == H
                pl.BlockSpec((H, 4 * H), lambda i: (0, 0)),
            ],
            out_specs=pl.BlockSpec((Td * Bp, H), lambda i: (0, 0)),
            scratch_shapes=[
                pltpu.VMEM((Te * Bp, 4 * H), jnp.float32),   # enc x @ W_ih
                pltpu.VMEM((Td * Bp, 4 * H), jnp.float32),   # dec x @ W_ih
            ]),
        out_shape=jax.ShapeDtypeStruct((Td * Bp, H), jnp.bfloat16),
        compiler_params=pltpu.CompilerParams(
            dimension_semantics=("arbitrary",),
            vmem_limit_bytes=_vmem_limit_bytes(rec_bytes)),
    )(enc_x, dec_x, enc_wih, enc_whh, dec_wih, dec_whh)

    # -------------------------- epilogue kernel --------------------------
    epi_bytes = (Bp * H * 2          # dec_h row block (bf16)
                 + H * Vt * 2        # lin_w chunk (bf16)
                 + Vt * 4            # bias chunk
                 + Bp * Vp * 4       # resident out block
                 + 2 * Bp * 4)       # m/l scratch

    out = pl.pallas_call(
        functools.partial(_epilogue_kernel, Vt=Vt),
        grid_spec=pltpu.PrefetchScalarGridSpec(
            num_scalar_prefetch=0,
            grid=(Td, Vp // Vt),
            in_specs=[
                pl.BlockSpec((Bp, H), lambda r, v: (r, 0)),
                pl.BlockSpec((H, Vt), lambda r, v: (0, v)),
                pl.BlockSpec((1, Vt), lambda r, v: (0, v)),
            ],
            out_specs=pl.BlockSpec((Bp, Vp), lambda r, v: (r, 0)),
            scratch_shapes=[
                pltpu.VMEM((Bp, 1), jnp.float32),   # running max
                pltpu.VMEM((Bp, 1), jnp.float32),   # running sum(exp)
            ]),
        # out_dtype=jnp.bfloat16 halves the HBM writeback if the consumer
        # tolerates it; default stays f32 for exactness of the log-probs.
        out_shape=jax.ShapeDtypeStruct((Td * Bp, Vp), out_dtype),
        compiler_params=pltpu.CompilerParams(
            dimension_semantics=("parallel", "arbitrary"),
            vmem_limit_bytes=_vmem_limit_bytes(epi_bytes)),
    )(dec_h, lin_w, lin_b)

    # Trim batch / vocab padding; stack of per-step (B, V) log-softmax tensors.
    return out.reshape(Td, Bp, Vp)[:, :B, :V]


# ----------------------------------------------------------------------------
# Pure-JAX f32 reference (mirrors the PyTorch semantics) for a sanity check.
# ----------------------------------------------------------------------------
def _lstm_ref(x, w_ih, w_hh, h0, c0):
    H = h0.shape[-1]

    def step(carry, xt):
        h, c = carry
        g = xt @ w_ih + h @ w_hh
        i = jax.nn.sigmoid(g[:, 0 * H:1 * H])
        f = jax.nn.sigmoid(g[:, 1 * H:2 * H])
        gg = jnp.tanh(g[:, 2 * H:3 * H])
        o = jax.nn.sigmoid(g[:, 3 * H:4 * H])
        c = f * c + i * gg
        h = o * jnp.tanh(c)
        return (h, c), h

    (hT, cT), outs = jax.lax.scan(step, (h0, c0), x)
    return outs, hT, cT


def seq2seq_ref(params, encoder_inputs, decoder_inputs, batch_size, hidden_size):
    enc_emb = jnp.take(params["enc_embedding"], encoder_inputs, axis=0)
    dec_emb = jnp.take(params["dec_embedding"], decoder_inputs, axis=0)
    h0 = jnp.zeros((batch_size, hidden_size), jnp.float32)
    c0 = jnp.zeros((batch_size, hidden_size), jnp.float32)
    _, h_enc, c_enc = _lstm_ref(enc_emb, params["enc_w_ih"], params["enc_w_hh"],
                                h0, c0)
    dec_out, _, _ = _lstm_ref(dec_emb, params["dec_w_ih"], params["dec_w_hh"],
                              h_enc, c_enc)
    logits = dec_out @ params["linear_w"] + params["linear_b"][0]
    return jax.nn.log_softmax(logits, axis=-1)


# ----------------------------------------------------------------------------
def init_params(key, encode_ntoken, decode_ntoken, input_size, hidden_size,
                initrange=0.1):
    ks = jax.random.split(key, 8)
    u = lambda k, shape: jax.random.uniform(
        k, shape, jnp.float32, -initrange, initrange)
    H, D = hidden_size, input_size
    return {
        "enc_embedding": u(ks[0], (encode_ntoken, D)),
        "dec_embedding": u(ks[1], (decode_ntoken, D)),
        # stored pre-transposed relative to PyTorch: (in, 4H) so gates = x @ W
        "enc_w_ih": u(ks[2], (D, 4 * H)),
        "enc_w_hh": u(ks[3], (H, 4 * H)),
        "dec_w_ih": u(ks[4], (H, 4 * H)),   # decoder LSTM input size == hidden
        "dec_w_hh": u(ks[5], (H, 4 * H)),
        "linear_w": u(ks[6], (H, decode_ntoken)),
        "linear_b": u(ks[7], (1, decode_ntoken)),
    }


if __name__ == "__main__":
    encode_ntoken = 20
    decode_ntoken = 16
    input_size = 32        # must equal hidden_size (see note at top)
    hidden_size = 32
    batch_size = 4
    enc_seq = 8
    dec_seq = 8

    key = jax.random.PRNGKey(0)
    kp, ke, kd = jax.random.split(key, 3)
    params = init_params(kp, encode_ntoken, decode_ntoken,
                         input_size, hidden_size)

    encoder_inputs = jax.random.randint(
        ke, (enc_seq, batch_size), 0, encode_ntoken, dtype=jnp.int32)
    decoder_inputs = jax.random.randint(
        kd, (dec_seq, batch_size), 0, decode_ntoken, dtype=jnp.int32)

    fwd = jax.jit(functools.partial(
        seq2seq_forward, batch_size=batch_size, hidden_size=hidden_size))
    pred = fwd(params, encoder_inputs, decoder_inputs)
    pred = jax.block_until_ready(pred)

    ref = seq2seq_ref(params, encoder_inputs, decoder_inputs,
                      batch_size, hidden_size)
    # bf16 MXU operands (f32 accumulation) -> slightly looser tolerance than
    # the pure-f32 check.
    np.testing.assert_allclose(np.asarray(pred), np.asarray(ref),
                               atol=1e-2, rtol=1e-2)

    assert pred.shape == (dec_seq, batch_size, decode_ntoken)
    print("KERNEL_OK")
</pallas_src>

<mosaic_0001>
module attributes {stable_mosaic.version = 11 : i64} {
  func.func @_recurrence_kernel(%arg0: i32, %arg1: memref<64x32xbf16, #tpu.memory_space<vmem>>, %arg2: memref<64x32xbf16, #tpu.memory_space<vmem>>, %arg3: memref<32x128xbf16, #tpu.memory_space<vmem>>, %arg4: memref<32x128xbf16, #tpu.memory_space<vmem>>, %arg5: memref<32x128xbf16, #tpu.memory_space<vmem>>, %arg6: memref<32x128xbf16, #tpu.memory_space<vmem>>, %arg7: memref<64x32xbf16, #tpu.memory_space<vmem>>, %arg8: memref<64x128xf32, #tpu.memory_space<vmem>>, %arg9: memref<64x128xf32, #tpu.memory_space<vmem>>) attributes {dimension_semantics = [#tpu.dimension_semantics<arbitrary>], iteration_bounds = array<i64: 1>, scalar_prefetch = 0 : i64, scratch_operands = 2 : i64, tpu.core_type = #tpu.core_type<tc>, window_params = [{pipeline_mode = #tpu.pipeline_mode<synchronous>, transform_indices = @transform_0, window_bounds = array<i64: 64, 32>}, {pipeline_mode = #tpu.pipeline_mode<synchronous>, transform_indices = @transform_1, window_bounds = array<i64: 64, 32>}, {pipeline_mode = #tpu.pipeline_mode<synchronous>, transform_indices = @transform_2, window_bounds = array<i64: 32, 128>}, {pipeline_mode = #tpu.pipeline_mode<synchronous>, transform_indices = @transform_3, window_bounds = array<i64: 32, 128>}, {pipeline_mode = #tpu.pipeline_mode<synchronous>, transform_indices = @transform_4, window_bounds = array<i64: 32, 128>}, {pipeline_mode = #tpu.pipeline_mode<synchronous>, transform_indices = @transform_5, window_bounds = array<i64: 32, 128>}, {pipeline_mode = #tpu.pipeline_mode<synchronous>, transform_indices = @transform_6, window_bounds = array<i64: 64, 32>}]} {
    %c0 = arith.constant 0 : index
    %c0_0 = arith.constant 0 : index
    %0 = vector.load %arg2[%c0, %c0_0] : memref<64x32xbf16, #tpu.memory_space<vmem>>, vector<64x32xbf16>
    %c0_1 = arith.constant 0 : index
    %c0_2 = arith.constant 0 : index
    %1 = vector.load %arg5[%c0_1, %c0_2] : memref<32x128xbf16, #tpu.memory_space<vmem>>, vector<32x128xbf16>
    %cst = arith.constant dense<0.000000e+00> : vector<64x128xf32>
    %2 = tpu.matmul %0, %1, %cst {dimension_numbers = #tpu.dot_dimension_numbers<[1], [0], [0], [1], [0, 0, 1, 1], [], []>} : vector<64x32xbf16>, vector<32x128xbf16>, vector<64x128xf32> -> vector<64x128xf32>
    %c0_3 = arith.constant 0 : index
    %c0_4 = arith.constant 0 : index
    %3 = vector.load %arg9[%c0_3, %c0_4] : memref<64x128xf32, #tpu.memory_space<vmem>>, vector<64x128xf32>
    tpu.vector_store %arg9[%c0_3, %c0_4], %2 {strides = array<i32>} : memref<64x128xf32, #tpu.memory_space<vmem>>, vector<64x128xf32>,
    %c0_5 = arith.constant 0 : index
    %c0_6 = arith.constant 0 : index
    %4 = vector.load %arg1[%c0_5, %c0_6] : memref<64x32xbf16, #tpu.memory_space<vmem>>, vector<64x32xbf16>
    %c0_7 = arith.constant 0 : index
    %c0_8 = arith.constant 0 : index
    %5 = vector.load %arg3[%c0_7, %c0_8] : memref<32x128xbf16, #tpu.memory_space<vmem>>, vector<32x128xbf16>
    %cst_9 = arith.constant dense<0.000000e+00> : vector<64x128xf32>
    %6 = tpu.matmul %4, %5, %cst_9 {dimension_numbers = #tpu.dot_dimension_numbers<[1], [0], [0], [1], [0, 0, 1, 1], [], []>} : vector<64x32xbf16>, vector<32x128xbf16>, vector<64x128xf32> -> vector<64x128xf32>
    %c0_10 = arith.constant 0 : index
    %c0_11 = arith.constant 0 : index
    %7 = vector.load %arg8[%c0_10, %c0_11] : memref<64x128xf32, #tpu.memory_space<vmem>>, vector<64x128xf32>
    tpu.vector_store %arg8[%c0_10, %c0_11], %6 {strides = array<i32>} : memref<64x128xf32, #tpu.memory_space<vmem>>, vector<64x128xf32>,
    %cst_12 = arith.constant 0.000000e+00 : f32
    %8 = vector.broadcast %cst_12 : f32 to vector<8x32xf32>
    %c0_13 = arith.constant 0 : index
    %c0_14 = arith.constant 0 : index
    %9 = vector.load %arg4[%c0_13, %c0_14] : memref<32x128xbf16, #tpu.memory_space<vmem>>, vector<32x128xbf16>
    %c0_i32 = arith.constant 0 : i32
    %c8_i32 = arith.constant 8 : i32
    %10 = arith.muli %c0_i32, %c8_i32 : i32
    %11 = tpu.assume_multiple %10, 8 : i32
    %12 = arith.index_cast %11 : i32 to index
    %c0_15 = arith.constant 0 : index
    %13 = vector.load %arg8[%12, %c0_15] : memref<64x128xf32, #tpu.memory_space<vmem>>, vector<8x128xf32>
    %14 = arith.truncf %8 : vector<8x32xf32> to vector<8x32xbf16>
    %cst_16 = arith.constant dense<0.000000e+00> : vector<8x128xf32>
    %15 = tpu.matmul %14, %9, %cst_16 {dimension_numbers = #tpu.dot_dimension_numbers<[1], [0], [0], [1], [0, 0, 1, 1], [], []>} : vector<8x32xbf16>, vector<32x128xbf16>, vector<8x128xf32> -> vector<8x128xf32>
    %16 = arith.addf %13, %15 : vector<8x128xf32>
    %17 = arith.negf %16 : vector<8x128xf32>
    %18 = math.exp %17 : vector<8x128xf32>
    %cst_17 = arith.constant 1.000000e+00 : f32
    %19 = vector.broadcast %cst_17 : f32 to vector<8x128xf32>
    %20 = arith.addf %19, %18 : vector<8x128xf32>
    %21 = arith.divf %19, %20 : vector<8x128xf32>
    %22 = math.tanh %16 : vector<8x128xf32>
    %23 = vector.extract_strided_slice %21 {offsets = [0, 0], sizes = [8, 32], strides = [1, 1]} : vector<8x128xf32> to vector<8x32xf32>
    %24 = vector.extract_strided_slice %21 {offsets = [0, 32], sizes = [8, 32], strides = [1, 1]} : vector<8x128xf32> to vector<8x32xf32>
    %25 = vector.extract_strided_slice %22 {offsets = [0, 64], sizes = [8, 32], strides = [1, 1]} : vector<8x128xf32> to vector<8x32xf32>
    %26 = vector.extract_strided_slice %21 {offsets = [0, 96], sizes = [8, 32], strides = [1, 1]} : vector<8x128xf32> to vector<8x32xf32>
    %27 = arith.mulf %24, %8 : vector<8x32xf32>
    %28 = arith.mulf %23, %25 : vector<8x32xf32>
    %29 = arith.addf %27, %28 : vector<8x32xf32>
    %30 = math.tanh %29 : vector<8x32xf32>
    %31 = arith.mulf %26, %30 : vector<8x32xf32>
    %c1_i32 = arith.constant 1 : i32
    %c8_i32_18 = arith.constant 8 : i32
    %32 = arith.muli %c1_i32, %c8_i32_18 : i32
    %33 = tpu.assume_multiple %32, 8 : i32
    %34 = arith.index_cast %33 : i32 to index
    %c0_19 = arith.constant 0 : index
    %35 = vector.load %arg8[%34, %c0_19] : memref<64x128xf32, #tpu.memory_space<vmem>>, vector<8x128xf32>
    %36 = arith.truncf %31 : vector<8x32xf32> to vector<8x32xbf16>
    %cst_20 = arith.constant dense<0.000000e+00> : vector<8x128xf32>
    %37 = tpu.matmul %36, %9, %cst_20 {dimension_numbers = #tpu.dot_dimension_numbers<[1], [0], [0], [1], [0, 0, 1, 1], [], []>} : vector<8x32xbf16>, vector<32x128xbf16>, vector<8x128xf32> -> vector<8x128xf32>
    %38 = arith.addf %35, %37 : vector<8x128xf32>
    %39 = arith.negf %38 : vector<8x128xf32>
    %40 = math.exp %39 : vector<8x128xf32>
    %cst_21 = arith.constant 1.000000e+00 : f32
    %41 = vector.broadcast %cst_21 : f32 to vector<8x128xf32>
    %42 = arith.addf %41, %40 : vector<8x128xf32>
    %43 = arith.divf %41, %42 : vector<8x128xf32>
    %44 = math.tanh %38 : vector<8x128xf32>
    %45 = vector.extract_strided_slice %43 {offsets = [0, 0], sizes = [8, 32], strides = [1, 1]} : vector<8x128xf32> to vector<8x32xf32>
    %46 = vector.extract_strided_slice %43 {offsets = [0, 32], sizes = [8, 32], strides = [1, 1]} : vector<8x128xf32> to vector<8x32xf32>
    %47 = vector.extract_strided_slice %44 {offsets = [0, 64], sizes = [8, 32], strides = [1, 1]} : vector<8x128xf32> to vector<8x32xf32>
    %48 = vector.extract_strided_slice %43 {offsets = [0, 96], sizes = [8, 32], strides = [1, 1]} : vector<8x128xf32> to vector<8x32xf32>
    %49 = arith.mulf %46, %29 : vector<8x32xf32>
    %50 = arith.mulf %45, %47 : vector<8x32xf32>
    %51 = arith.addf %49, %50 : vector<8x32xf32>
    %52 = math.tanh %51 : vector<8x32xf32>
    %53 = arith.mulf %48, %52 : vector<8x32xf32>
    %c2_i32 = arith.constant 2 : i32
    %c8_i32_22 = arith.constant 8 : i32
    %54 = arith.muli %c2_i32, %c8_i32_22 : i32
    %55 = tpu.assume_multiple %54, 8 : i32
    %56 = arith.index_cast %55 : i32 to index
    %c0_23 = arith.constant 0 : index
    %57 = vector.load %arg8[%56, %c0_23] : memref<64x128xf32, #tpu.memory_space<vmem>>, vector<8x128xf32>
    %58 = arith.truncf %53 : vector<8x32xf32> to vector<8x32xbf16>
    %cst_24 = arith.constant dense<0.000000e+00> : vector<8x128xf32>
    %59 = tpu.matmul %58, %9, %cst_24 {dimension_numbers = #tpu.dot_dimension_numbers<[1], [0], [0], [1], [0, 0, 1, 1], [], []>} : vector<8x32xbf16>, vector<32x128xbf16>, vector<8x128xf32> -> vector<8x128xf32>
    %60 = arith.addf %57, %59 : vector<8x128xf32>
    %61 = arith.negf %60 : vector<8x128xf32>
    %62 = math.exp %61 : vector<8x128xf32>
    %cst_25 = arith.constant 1.000000e+00 : f32
    %63 = vector.broadcast %cst_25 : f32 to vector<8x128xf32>
    %64 = arith.addf %63, %62 : vector<8x128xf32>
    %65 = arith.divf %63, %64 : vector<8x128xf32>
    %66 = math.tanh %60 : vector<8x128xf32>
    %67 = vector.extract_strided_slice %65 {offsets = [0, 0], sizes = [8, 32], strides = [1, 1]} : vector<8x128xf32> to vector<8x32xf32>
    %68 = vector.extract_strided_slice %65 {offsets = [0, 32], sizes = [8, 32], strides = [1, 1]} : vector<8x128xf32> to vector<8x32xf32>
    %69 = vector.extract_strided_slice %66 {offsets = [0, 64], sizes = [8, 32], strides = [1, 1]} : vector<8x128xf32> to vector<8x32xf32>
    %70 = vector.extract_strided_slice %65 {offsets = [0, 96], sizes = [8, 32], strides = [1, 1]} : vector<8x128xf32> to vector<8x32xf32>
    %71 = arith.mulf %68, %51 : vector<8x32xf32>
    %72 = arith.mulf %67, %69 : vector<8x32xf32>
    %73 = arith.addf %71, %72 : vector<8x32xf32>
    %74 = math.tanh %73 : vector<8x32xf32>
    %75 = arith.mulf %70, %74 : vector<8x32xf32>
    %c3_i32 = arith.constant 3 : i32
    %c8_i32_26 = arith.constant 8 : i32
    %76 = arith.muli %c3_i32, %c8_i32_26 : i32
    %77 = tpu.assume_multiple %76, 8 : i32
    %78 = arith.index_cast %77 : i32 to index
    %c0_27 = arith.constant 0 : index
    %79 = vector.load %arg8[%78, %c0_27] : memref<64x128xf32, #tpu.memory_space<vmem>>, vector<8x128xf32>
    %80 = arith.truncf %75 : vector<8x32xf32> to vector<8x32xbf16>
    %cst_28 = arith.constant dense<0.000000e+00> : vector<8x128xf32>
    %81 = tpu.matmul %80, %9, %cst_28 {dimension_numbers = #tpu.dot_dimension_numbers<[1], [0], [0], [1], [0, 0, 1, 1], [], []>} : vector<8x32xbf16>, vector<32x128xbf16>, vector<8x128xf32> -> vector<8x128xf32>
    %82 = arith.addf %79, %81 : vector<8x128xf32>
    %83 = arith.negf %82 : vector<8x128xf32>
    %84 = math.exp %83 : vector<8x128xf32>
    %cst_29 = arith.constant 1.000000e+00 : f32
    %85 = vector.broadcast %cst_29 : f32 to vector<8x128xf32>
    %86 = arith.addf %85, %84 : vector<8x128xf32>
    %87 = arith.divf %85, %86 : vector<8x128xf32>
    %88 = math.tanh %82 : vector<8x128xf32>
    %89 = vector.extract_strided_slice %87 {offsets = [0, 0], sizes = [8, 32], strides = [1, 1]} : vector<8x128xf32> to vector<8x32xf32>
    %90 = vector.extract_strided_slice %87 {offsets = [0, 32], sizes = [8, 32], strides = [1, 1]} : vector<8x128xf32> to vector<8x32xf32>
    %91 = vector.extract_strided_slice %88 {offsets = [0, 64], sizes = [8, 32], strides = [1, 1]} : vector<8x128xf32> to vector<8x32xf32>
    %92 = vector.extract_strided_slice %87 {offsets = [0, 96], sizes = [8, 32], strides = [1, 1]} : vector<8x128xf32> to vector<8x32xf32>
    %93 = arith.mulf %90, %73 : vector<8x32xf32>
    %94 = arith.mulf %89, %91 : vector<8x32xf32>
    %95 = arith.addf %93, %94 : vector<8x32xf32>
    %96 = math.tanh %95 : vector<8x32xf32>
    %97 = arith.mulf %92, %96 : vector<8x32xf32>
    %c4_i32 = arith.constant 4 : i32
    %c8_i32_30 = arith.constant 8 : i32
    %98 = arith.muli %c4_i32, %c8_i32_30 : i32
    %99 = tpu.assume_multiple %98, 8 : i32
    %100 = arith.index_cast %99 : i32 to index
    %c0_31 = arith.constant 0 : index
    %101 = vector.load %arg8[%100, %c0_31] : memref<64x128xf32, #tpu.memory_space<vmem>>, vector<8x128xf32>
    %102 = arith.truncf %97 : vector<8x32xf32> to vector<8x32xbf16>
    %cst_32 = arith.constant dense<0.000000e+00> : vector<8x128xf32>
    %103 = tpu.matmul %102, %9, %cst_32 {dimension_numbers = #tpu.dot_dimension_numbers<[1], [0], [0], [1], [0, 0, 1, 1], [], []>} : vector<8x32xbf16>, vector<32x128xbf16>, vector<8x128xf32> -> vector<8x128xf32>
    %104 = arith.addf %101, %103 : vector<8x128xf32>
    %105 = arith.negf %104 : vector<8x128xf32>
    %106 = math.exp %105 : vector<8x128xf32>
    %cst_33 = arith.constant 1.000000e+00 : f32
    %107 = vector.broadcast %cst_33 : f32 to vector<8x128xf32>
    %108 = arith.addf %107, %106 : vector<8x128xf32>
    %109 = arith.divf %107, %108 : vector<8x128xf32>
    %110 = math.tanh %104 : vector<8x128xf32>
    %111 = vector.extract_strided_slice %109 {offsets = [0, 0], sizes = [8, 32], strides = [1, 1]} : vector<8x128xf32> to vector<8x32xf32>
    %112 = vector.extract_strided_slice %109 {offsets = [0, 32], sizes = [8, 32], strides = [1, 1]} : vector<8x128xf32> to vector<8x32xf32>
    %113 = vector.extract_strided_slice %110 {offsets = [0, 64], sizes = [8, 32], strides = [1, 1]} : vector<8x128xf32> to vector<8x32xf32>
    %114 = vector.extract_strided_slice %109 {offsets = [0, 96], sizes = [8, 32], strides = [1, 1]} : vector<8x128xf32> to vector<8x32xf32>
    %115 = arith.mulf %112, %95 : vector<8x32xf32>
    %116 = arith.mulf %111, %113 : vector<8x32xf32>
    %117 = arith.addf %115, %116 : vector<8x32xf32>
    %118 = math.tanh %117 : vector<8x32xf32>
    %119 = arith.mulf %114, %118 : vector<8x32xf32>
    %c5_i32 = arith.constant 5 : i32
    %c8_i32_34 = arith.constant 8 : i32
    %120 = arith.muli %c5_i32, %c8_i32_34 : i32
    %121 = tpu.assume_multiple %120, 8 : i32
    %122 = arith.index_cast %121 : i32 to index
    %c0_35 = arith.constant 0 : index
    %123 = vector.load %arg8[%122, %c0_35] : memref<64x128xf32, #tpu.memory_space<vmem>>, vector<8x128xf32>
    %124 = arith.truncf %119 : vector<8x32xf32> to vector<8x32xbf16>
    %cst_36 = arith.constant dense<0.000000e+00> : vector<8x128xf32>
    %125 = tpu.matmul %124, %9, %cst_36 {dimension_numbers = #tpu.dot_dimension_numbers<[1], [0], [0], [1], [0, 0, 1, 1], [], []>} : vector<8x32xbf16>, vector<32x128xbf16>, vector<8x128xf32> -> vector<8x128xf32>
    %126 = arith.addf %123, %125 : vector<8x128xf32>
    %127 = arith.negf %126 : vector<8x128xf32>
    %128 = math.exp %127 : vector<8x128xf32>
    %cst_37 = arith.constant 1.000000e+00 : f32
    %129 = vector.broadcast %cst_37 : f32 to vector<8x128xf32>
    %130 = arith.addf %129, %128 : vector<8x128xf32>
    %131 = arith.divf %129, %130 : vector<8x128xf32>
    %132 = math.tanh %126 : vector<8x128xf32>
    %133 = vector.extract_strided_slice %131 {offsets = [0, 0], sizes = [8, 32], strides = [1, 1]} : vector<8x128xf32> to vector<8x32xf32>
    %134 = vector.extract_strided_slice %131 {offsets = [0, 32], sizes = [8, 32], strides = [1, 1]} : vector<8x128xf32> to vector<8x32xf32>
    %135 = vector.extract_strided_slice %132 {offsets = [0, 64], sizes = [8, 32], strides = [1, 1]} : vector<8x128xf32> to vector<8x32xf32>
    %136 = vector.extract_strided_slice %131 {offsets = [0, 96], sizes = [8, 32], strides = [1, 1]} : vector<8x128xf32> to vector<8x32xf32>
    %137 = arith.mulf %134, %117 : vector<8x32xf32>
    %138 = arith.mulf %133, %135 : vector<8x32xf32>
    %139 = arith.addf %137, %138 : vector<8x32xf32>
    %140 = math.tanh %139 : vector<8x32xf32>
    %141 = arith.mulf %136, %140 : vector<8x32xf32>
    %c6_i32 = arith.constant 6 : i32
    %c8_i32_38 = arith.constant 8 : i32
    %142 = arith.muli %c6_i32, %c8_i32_38 : i32
    %143 = tpu.assume_multiple %142, 8 : i32
    %144 = arith.index_cast %143 : i32 to index
    %c0_39 = arith.constant 0 : index
    %145 = vector.load %arg8[%144, %c0_39] : memref<64x128xf32, #tpu.memory_space<vmem>>, vector<8x128xf32>
    %146 = arith.truncf %141 : vector<8x32xf32> to vector<8x32xbf16>
    %cst_40 = arith.constant dense<0.000000e+00> : vector<8x128xf32>
    %147 = tpu.matmul %146, %9, %cst_40 {dimension_numbers = #tpu.dot_dimension_numbers<[1], [0], [0], [1], [0, 0, 1, 1], [], []>} : vector<8x32xbf16>, vector<32x128xbf16>, vector<8x128xf32> -> vector<8x128xf32>
    %148 = arith.addf %145, %147 : vector<8x128xf32>
    %149 = arith.negf %148 : vector<8x128xf32>
    %150 = math.exp %149 : vector<8x128xf32>
    %cst_41 = arith.constant 1.000000e+00 : f32
    %151 = vector.broadcast %cst_41 : f32 to vector<8x128xf32>
    %152 = arith.addf %151, %150 : vector<8x128xf32>
    %153 = arith.divf %151, %152 : vector<8x128xf32>
    %154 = math.tanh %148 : vector<8x128xf32>
    %155 = vector.extract_strided_slice %153 {offsets = [0, 0], sizes = [8, 32], strides = [1, 1]} : vector<8x128xf32> to vector<8x32xf32>
    %156 = vector.extract_strided_slice %153 {offsets = [0, 32], sizes = [8, 32], strides = [1, 1]} : vector<8x128xf32> to vector<8x32xf32>
    %157 = vector.extract_strided_slice %154 {offsets = [0, 64], sizes = [8, 32], strides = [1, 1]} : vector<8x128xf32> to vector<8x32xf32>
    %158 = vector.extract_strided_slice %153 {offsets = [0, 96], sizes = [8, 32], strides = [1, 1]} : vector<8x128xf32> to vector<8x32xf32>
    %159 = arith.mulf %156, %139 : vector<8x32xf32>
    %160 = arith.mulf %155, %157 : vector<8x32xf32>
    %161 = arith.addf %159, %160 : vector<8x32xf32>
    %162 = math.tanh %161 : vector<8x32xf32>
    %163 = arith.mulf %158, %162 : vector<8x32xf32>
    %c7_i32 = arith.constant 7 : i32
    %c8_i32_42 = arith.constant 8 : i32
    %164 = arith.muli %c7_i32, %c8_i32_42 : i32
    %165 = tpu.assume_multiple %164, 8 : i32
    %166 = arith.index_cast %165 : i32 to index
    %c0_43 = arith.constant 0 : index
    %167 = vector.load %arg8[%166, %c0_43] : memref<64x128xf32, #tpu.memory_space<vmem>>, vector<8x128xf32>
    %168 = arith.truncf %163 : vector<8x32xf32> to vector<8x32xbf16>
    %cst_44 = arith.constant dense<0.000000e+00> : vector<8x128xf32>
    %169 = tpu.matmul %168, %9, %cst_44 {dimension_numbers = #tpu.dot_dimension_numbers<[1], [0], [0], [1], [0, 0, 1, 1], [], []>} : vector<8x32xbf16>, vector<32x128xbf16>, vector<8x128xf32> -> vector<8x128xf32>
    %170 = arith.addf %167, %169 : vector<8x128xf32>
    %171 = arith.negf %170 : vector<8x128xf32>
    %172 = math.exp %171 : vector<8x128xf32>
    %cst_45 = arith.constant 1.000000e+00 : f32
    %173 = vector.broadcast %cst_45 : f32 to vector<8x128xf32>
    %174 = arith.addf %173, %172 : vector<8x128xf32>
    %175 = arith.divf %173, %174 : vector<8x128xf32>
    %176 = math.tanh %170 : vector<8x128xf32>
    %177 = vector.extract_strided_slice %175 {offsets = [0, 0], sizes = [8, 32], strides = [1, 1]} : vector<8x128xf32> to vector<8x32xf32>
    %178 = vector.extract_strided_slice %175 {offsets = [0, 32], sizes = [8, 32], strides = [1, 1]} : vector<8x128xf32> to vector<8x32xf32>
    %179 = vector.extract_strided_slice %176 {offsets = [0, 64], sizes = [8, 32], strides = [1, 1]} : vector<8x128xf32> to vector<8x32xf32>
    %180 = vector.extract_strided_slice %175 {offsets = [0, 96], sizes = [8, 32], strides = [1, 1]} : vector<8x128xf32> to vector<8x32xf32>
    %181 = arith.mulf %178, %161 : vector<8x32xf32>
    %182 = arith.mulf %177, %179 : vector<8x32xf32>
    %183 = arith.addf %181, %182 : vector<8x32xf32>
    %184 = math.tanh %183 : vector<8x32xf32>
    %185 = arith.mulf %180, %184 : vector<8x32xf32>
    %c8_i32_46 = arith.constant 8 : i32
    %c0_47 = arith.constant 0 : index
    %c0_48 = arith.constant 0 : index
    %186 = vector.load %arg6[%c0_47, %c0_48] : memref<32x128xbf16, #tpu.memory_space<vmem>>, vector<32x128xbf16>
    %c0_i32_49 = arith.constant 0 : i32
    %c8_i32_50 = arith.constant 8 : i32
    %187 = arith.muli %c0_i32_49, %c8_i32_50 : i32
    %188 = tpu.assume_multiple %187, 8 : i32
    %189 = arith.index_cast %188 : i32 to index
    %c0_51 = arith.constant 0 : index
    %190 = vector.load %arg9[%189, %c0_51] : memref<64x128xf32, #tpu.memory_space<vmem>>, vector<8x128xf32>
    %191 = arith.truncf %185 : vector<8x32xf32> to vector<8x32xbf16>
    %cst_52 = arith.constant dense<0.000000e+00> : vector<8x128xf32>
    %192 = tpu.matmul %191, %186, %cst_52 {dimension_numbers = #tpu.dot_dimension_numbers<[1], [0], [0], [1], [0, 0, 1, 1], [], []>} : vector<8x32xbf16>, vector<32x128xbf16>, vector<8x128xf32> -> vector<8x128xf32>
    %193 = arith.addf %190, %192 : vector<8x128xf32>
    %194 = arith.negf %193 : vector<8x128xf32>
    %195 = math.exp %194 : vector<8x128xf32>
    %cst_53 = arith.constant 1.000000e+00 : f32
    %196 = vector.broadcast %cst_53 : f32 to vector<8x128xf32>
    %197 = arith.addf %196, %195 : vector<8x128xf32>
    %198 = arith.divf %196, %197 : vector<8x128xf32>
    %199 = math.tanh %193 : vector<8x128xf32>
    %200 = vector.extract_strided_slice %198 {offsets = [0, 0], sizes = [8, 32], strides = [1, 1]} : vector<8x128xf32> to vector<8x32xf32>
    %201 = vector.extract_strided_slice %198 {offsets = [0, 32], sizes = [8, 32], strides = [1, 1]} : vector<8x128xf32> to vector<8x32xf32>
    %202 = vector.extract_strided_slice %199 {offsets = [0, 64], sizes = [8, 32], strides = [1, 1]} : vector<8x128xf32> to vector<8x32xf32>
    %203 = vector.extract_strided_slice %198 {offsets = [0, 96], sizes = [8, 32], strides = [1, 1]} : vector<8x128xf32> to vector<8x32xf32>
    %204 = arith.mulf %201, %183 : vector<8x32xf32>
    %205 = arith.mulf %200, %202 : vector<8x32xf32>
    %206 = arith.addf %204, %205 : vector<8x32xf32>
    %207 = math.tanh %206 : vector<8x32xf32>
    %208 = arith.mulf %203, %207 : vector<8x32xf32>
    %209 = arith.truncf %208 : vector<8x32xf32> to vector<8x32xbf16>
    %210 = arith.index_cast %188 : i32 to index
    %c0_54 = arith.constant 0 : index
    %211 = vector.load %arg7[%210, %c0_54] : memref<64x32xbf16, #tpu.memory_space<vmem>>, vector<8x32xbf16>
    tpu.vector_store %arg7[%210, %c0_54], %209 {strides = array<i32>} : memref<64x32xbf16, #tpu.memory_space<vmem>>, vector<8x32xbf16>,
    %c1_i32_55 = arith.constant 1 : i32
    %c8_i32_56 = arith.constant 8 : i32
    %212 = arith.muli %c1_i32_55, %c8_i32_56 : i32
    %213 = tpu.assume_multiple %212, 8 : i32
    %214 = arith.index_cast %213 : i32 to index
    %c0_57 = arith.constant 0 : index
    %215 = vector.load %arg9[%214, %c0_57] : memref<64x128xf32, #tpu.memory_space<vmem>>, vector<8x128xf32>
    %216 = arith.truncf %208 : vector<8x32xf32> to vector<8x32xbf16>
    %cst_58 = arith.constant dense<0.000000e+00> : vector<8x128xf32>
    %217 = tpu.matmul %216, %186, %cst_58 {dimension_numbers = #tpu.dot_dimension_numbers<[1], [0], [0], [1], [0, 0, 1, 1], [], []>} : vector<8x32xbf16>, vector<32x128xbf16>, vector<8x128xf32> -> vector<8x128xf32>
    %218 = arith.addf %215, %217 : vector<8x128xf32>
    %219 = arith.negf %218 : vector<8x128xf32>
    %220 = math.exp %219 : vector<8x128xf32>
    %cst_59 = arith.constant 1.000000e+00 : f32
    %221 = vector.broadcast %cst_59 : f32 to vector<8x128xf32>
    %222 = arith.addf %221, %220 : vector<8x128xf32>
    %223 = arith.divf %221, %222 : vector<8x128xf32>
    %224 = math.tanh %218 : vector<8x128xf32>
    %225 = vector.extract_strided_slice %223 {offsets = [0, 0], sizes = [8, 32], strides = [1, 1]} : vector<8x128xf32> to vector<8x32xf32>
    %226 = vector.extract_strided_slice %223 {offsets = [0, 32], sizes = [8, 32], strides = [1, 1]} : vector<8x128xf32> to vector<8x32xf32>
    %227 = vector.extract_strided_slice %224 {offsets = [0, 64], sizes = [8, 32], strides = [1, 1]} : vector<8x128xf32> to vector<8x32xf32>
    %228 = vector.extract_strided_slice %223 {offsets = [0, 96], sizes = [8, 32], strides = [1, 1]} : vector<8x128xf32> to vector<8x32xf32>
    %229 = arith.mulf %226, %206 : vector<8x32xf32>
    %230 = arith.mulf %225, %227 : vector<8x32xf32>
    %231 = arith.addf %229, %230 : vector<8x32xf32>
    %232 = math.tanh %231 : vector<8x32xf32>
    %233 = arith.mulf %228, %232 : vector<8x32xf32>
    %234 = arith.truncf %233 : vector<8x32xf32> to vector<8x32xbf16>
    %235 = arith.index_cast %213 : i32 to index
    %c0_60 = arith.constant 0 : index
    %236 = vector.load %arg7[%235, %c0_60] : memref<64x32xbf16, #tpu.memory_space<vmem>>, vector<8x32xbf16>
    tpu.vector_store %arg7[%235, %c0_60], %234 {strides = array<i32>} : memref<64x32xbf16, #tpu.memory_space<vmem>>, vector<8x32xbf16>,
    %c2_i32_61 = arith.constant 2 : i32
    %c8_i32_62 = arith.constant 8 : i32
    %237 = arith.muli %c2_i32_61, %c8_i32_62 : i32
    %238 = tpu.assume_multiple %237, 8 : i32
    %239 = arith.index_cast %238 : i32 to index
    %c0_63 = arith.constant 0 : index
    %240 = vector.load %arg9[%239, %c0_63] : memref<64x128xf32, #tpu.memory_space<vmem>>, vector<8x128xf32>
    %241 = arith.truncf %233 : vector<8x32xf32> to vector<8x32xbf16>
    %cst_64 = arith.constant dense<0.000000e+00> : vector<8x128xf32>
    %242 = tpu.matmul %241, %186, %cst_64 {dimension_numbers = #tpu.dot_dimension_numbers<[1], [0], [0], [1], [0, 0, 1, 1], [], []>} : vector<8x32xbf16>, vector<32x128xbf16>, vector<8x128xf32> -> vector<8x128xf32>
    %243 = arith.addf %240, %242 : vector<8x128xf32>
    %244 = arith.negf %243 : vector<8x128xf32>
    %245 = math.exp %244 : vector<8x128xf32>
    %cst_65 = arith.constant 1.000000e+00 : f32
    %246 = vector.broadcast %cst_65 : f32 to vector<8x128xf32>
    %247 = arith.addf %246, %245 : vector<8x128xf32>
    %248 = arith.divf %246, %247 : vector<8x128xf32>
    %249 = math.tanh %243 : vector<8x128xf32>
    %250 = vector.extract_strided_slice %248 {offsets = [0, 0], sizes = [8, 32], strides = [1, 1]} : vector<8x128xf32> to vector<8x32xf32>
    %251 = vector.extract_strided_slice %248 {offsets = [0, 32], sizes = [8, 32], strides = [1, 1]} : vector<8x128xf32> to vector<8x32xf32>
    %252 = vector.extract_strided_slice %249 {offsets = [0, 64], sizes = [8, 32], strides = [1, 1]} : vector<8x128xf32> to vector<8x32xf32>
    %253 = vector.extract_strided_slice %248 {offsets = [0, 96], sizes = [8, 32], strides = [1, 1]} : vector<8x128xf32> to vector<8x32xf32>
    %254 = arith.mulf %251, %231 : vector<8x32xf32>
    %255 = arith.mulf %250, %252 : vector<8x32xf32>
    %256 = arith.addf %254, %255 : vector<8x32xf32>
    %257 = math.tanh %256 : vector<8x32xf32>
    %258 = arith.mulf %253, %257 : vector<8x32xf32>
    %259 = arith.truncf %258 : vector<8x32xf32> to vector<8x32xbf16>
    %260 = arith.index_cast %238 : i32 to index
    %c0_66 = arith.constant 0 : index
    %261 = vector.load %arg7[%260, %c0_66] : memref<64x32xbf16, #tpu.memory_space<vmem>>, vector<8x32xbf16>
    tpu.vector_store %arg7[%260, %c0_66], %259 {strides = array<i32>} : memref<64x32xbf16, #tpu.memory_space<vmem>>, vector<8x32xbf16>,
    %c3_i32_67 = arith.constant 3 : i32
    %c8_i32_68 = arith.constant 8 : i32
    %262 = arith.muli %c3_i32_67, %c8_i32_68 : i32
    %263 = tpu.assume_multiple %262, 8 : i32
    %264 = arith.index_cast %263 : i32 to index
    %c0_69 = arith.constant 0 : index
    %265 = vector.load %arg9[%264, %c0_69] : memref<64x128xf32, #tpu.memory_space<vmem>>, vector<8x128xf32>
    %266 = arith.truncf %258 : vector<8x32xf32> to vector<8x32xbf16>
    %cst_70 = arith.constant dense<0.000000e+00> : vector<8x128xf32>
    %267 = tpu.matmul %266, %186, %cst_70 {dimension_numbers = #tpu.dot_dimension_numbers<[1], [0], [0], [1], [0, 0, 1, 1], [], []>} : vector<8x32xbf16>, vector<32x128xbf16>, vector<8x128xf32> -> vector<8x128xf32>
    %268 = arith.addf %265, %267 : vector<8x128xf32>
    %269 = arith.negf %268 : vector<8x128xf32>
    %270 = math.exp %269 : vector<8x128xf32>
    %cst_71 = arith.constant 1.000000e+00 : f32
    %271 = vector.broadcast %cst_71 : f32 to vector<8x128xf32>
    %272 = arith.addf %271, %270 : vector<8x128xf32>
    %273 = arith.divf %271, %272 : vector<8x128xf32>
    %274 = math.tanh %268 : vector<8x128xf32>
    %275 = vector.extract_strided_slice %273 {offsets = [0, 0], sizes = [8, 32], strides = [1, 1]} : vector<8x128xf32> to vector<8x32xf32>
    %276 = vector.extract_strided_slice %273 {offsets = [0, 32], sizes = [8, 32], strides = [1, 1]} : vector<8x128xf32> to vector<8x32xf32>
    %277 = vector.extract_strided_slice %274 {offsets = [0, 64], sizes = [8, 32], strides = [1, 1]} : vector<8x128xf32> to vector<8x32xf32>
    %278 = vector.extract_strided_slice %273 {offsets = [0, 96], sizes = [8, 32], strides = [1, 1]} : vector<8x128xf32> to vector<8x32xf32>
    %279 = arith.mulf %276, %256 : vector<8x32xf32>
    %280 = arith.mulf %275, %277 : vector<8x32xf32>
    %281 = arith.addf %279, %280 : vector<8x32xf32>
    %282 = math.tanh %281 : vector<8x32xf32>
    %283 = arith.mulf %278, %282 : vector<8x32xf32>
    %284 = arith.truncf %283 : vector<8x32xf32> to vector<8x32xbf16>
    %285 = arith.index_cast %263 : i32 to index
    %c0_72 = arith.constant 0 : index
    %286 = vector.load %arg7[%285, %c0_72] : memref<64x32xbf16, #tpu.memory_space<vmem>>, vector<8x32xbf16>
    tpu.vector_store %arg7[%285, %c0_72], %284 {strides = array<i32>} : memref<64x32xbf16, #tpu.memory_space<vmem>>, vector<8x32xbf16>,
    %c4_i32_73 = arith.constant 4 : i32
    %c8_i32_74 = arith.constant 8 : i32
    %287 = arith.muli %c4_i32_73, %c8_i32_74 : i32
    %288 = tpu.assume_multiple %287, 8 : i32
    %289 = arith.index_cast %288 : i32 to index
    %c0_75 = arith.constant 0 : index
    %290 = vector.load %arg9[%289, %c0_75] : memref<64x128xf32, #tpu.memory_space<vmem>>, vector<8x128xf32>
    %291 = arith.truncf %283 : vector<8x32xf32> to vector<8x32xbf16>
    %cst_76 = arith.constant dense<0.000000e+00> : vector<8x128xf32>
    %292 = tpu.matmul %291, %186, %cst_76 {dimension_numbers = #tpu.dot_dimension_numbers<[1], [0], [0], [1], [0, 0, 1, 1], [], []>} : vector<8x32xbf16>, vector<32x128xbf16>, vector<8x128xf32> -> vector<8x128xf32>
    %293 = arith.addf %290, %292 : vector<8x128xf32>
    %294 = arith.negf %293 : vector<8x128xf32>
    %295 = math.exp %294 : vector<8x128xf32>
    %cst_77 = arith.constant 1.000000e+00 : f32
    %296 = vector.broadcast %cst_77 : f32 to vector<8x128xf32>
    %297 = arith.addf %296, %295 : vector<8x128xf32>
    %298 = arith.divf %296, %297 : vector<8x128xf32>
    %299 = math.tanh %293 : vector<8x128xf32>
    %300 = vector.extract_strided_slice %298 {offsets = [0, 0], sizes = [8, 32], strides = [1, 1]} : vector<8x128xf32> to vector<8x32xf32>
    %301 = vector.extract_strided_slice %298 {offsets = [0, 32], sizes = [8, 32], strides = [1, 1]} : vector<8x128xf32> to vector<8x32xf32>
    %302 = vector.extract_strided_slice %299 {offsets = [0, 64], sizes = [8, 32], strides = [1, 1]} : vector<8x128xf32> to vector<8x32xf32>
    %303 = vector.extract_strided_slice %298 {offsets = [0, 96], sizes = [8, 32], strides = [1, 1]} : vector<8x128xf32> to vector<8x32xf32>
    %304 = arith.mulf %301, %281 : vector<8x32xf32>
    %305 = arith.mulf %300, %302 : vector<8x32xf32>
    %306 = arith.addf %304, %305 : vector<8x32xf32>
    %307 = math.tanh %306 : vector<8x32xf32>
    %308 = arith.mulf %303, %307 : vector<8x32xf32>
    %309 = arith.truncf %308 : vector<8x32xf32> to vector<8x32xbf16>
    %310 = arith.index_cast %288 : i32 to index
    %c0_78 = arith.constant 0 : index
    %311 = vector.load %arg7[%310, %c0_78] : memref<64x32xbf16, #tpu.memory_space<vmem>>, vector<8x32xbf16>
    tpu.vector_store %arg7[%310, %c0_78], %309 {strides = array<i32>} : memref<64x32xbf16, #tpu.memory_space<vmem>>, vector<8x32xbf16>,
    %c5_i32_79 = arith.constant 5 : i32
    %c8_i32_80 = arith.constant 8 : i32
    %312 = arith.muli %c5_i32_79, %c8_i32_80 : i32
    %313 = tpu.assume_multiple %312, 8 : i32
    %314 = arith.index_cast %313 : i32 to index
    %c0_81 = arith.constant 0 : index
    %315 = vector.load %arg9[%314, %c0_81] : memref<64x128xf32, #tpu.memory_space<vmem>>, vector<8x128xf32>
    %316 = arith.truncf %308 : vector<8x32xf32> to vector<8x32xbf16>
    %cst_82 = arith.constant dense<0.000000e+00> : vector<8x128xf32>
    %317 = tpu.matmul %316, %186, %cst_82 {dimension_numbers = #tpu.dot_dimension_numbers<[1], [0], [0], [1], [0, 0, 1, 1], [], []>} : vector<8x32xbf16>, vector<32x128xbf16>, vector<8x128xf32> -> vector<8x128xf32>
    %318 = arith.addf %315, %317 : vector<8x128xf32>
    %319 = arith.negf %318 : vector<8x128xf32>
    %320 = math.exp %319 : vector<8x128xf32>
    %cst_83 = arith.constant 1.000000e+00 : f32
    %321 = vector.broadcast %cst_83 : f32 to vector<8x128xf32>
    %322 = arith.addf %321, %320 : vector<8x128xf32>
    %323 = arith.divf %321, %322 : vector<8x128xf32>
    %324 = math.tanh %318 : vector<8x128xf32>
    %325 = vector.extract_strided_slice %323 {offsets = [0, 0], sizes = [8, 32], strides = [1, 1]} : vector<8x128xf32> to vector<8x32xf32>
    %326 = vector.extract_strided_slice %323 {offsets = [0, 32], sizes = [8, 32], strides = [1, 1]} : vector<8x128xf32> to vector<8x32xf32>
    %327 = vector.extract_strided_slice %324 {offsets = [0, 64], sizes = [8, 32], strides = [1, 1]} : vector<8x128xf32> to vector<8x32xf32>
    %328 = vector.extract_strided_slice %323 {offsets = [0, 96], sizes = [8, 32], strides = [1, 1]} : vector<8x128xf32> to vector<8x32xf32>
    %329 = arith.mulf %326, %306 : vector<8x32xf32>
    %330 = arith.mulf %325, %327 : vector<8x32xf32>
    %331 = arith.addf %329, %330 : vector<8x32xf32>
    %332 = math.tanh %331 : vector<8x32xf32>
    %333 = arith.mulf %328, %332 : vector<8x32xf32>
    %334 = arith.truncf %333 : vector<8x32xf32> to vector<8x32xbf16>
    %335 = arith.index_cast %313 : i32 to index
    %c0_84 = arith.constant 0 : index
    %336 = vector.load %arg7[%335, %c0_84] : memref<64x32xbf16, #tpu.memory_space<vmem>>, vector<8x32xbf16>
    tpu.vector_store %arg7[%335, %c0_84], %334 {strides = array<i32>} : memref<64x32xbf16, #tpu.memory_space<vmem>>, vector<8x32xbf16>,
    %c6_i32_85 = arith.constant 6 : i32
    %c8_i32_86 = arith.constant 8 : i32
    %337 = arith.muli %c6_i32_85, %c8_i32_86 : i32
    %338 = tpu.assume_multiple %337, 8 : i32
    %339 = arith.index_cast %338 : i32 to index
    %c0_87 = arith.constant 0 : index
    %340 = vector.load %arg9[%339, %c0_87] : memref<64x128xf32, #tpu.memory_space<vmem>>, vector<8x128xf32>
    %341 = arith.truncf %333 : vector<8x32xf32> to vector<8x32xbf16>
    %cst_88 = arith.constant dense<0.000000e+00> : vector<8x128xf32>
    %342 = tpu.matmul %341, %186, %cst_88 {dimension_numbers = #tpu.dot_dimension_numbers<[1], [0], [0], [1], [0, 0, 1, 1], [], []>} : vector<8x32xbf16>, vector<32x128xbf16>, vector<8x128xf32> -> vector<8x128xf32>
    %343 = arith.addf %340, %342 : vector<8x128xf32>
    %344 = arith.negf %343 : vector<8x128xf32>
    %345 = math.exp %344 : vector<8x128xf32>
    %cst_89 = arith.constant 1.000000e+00 : f32
    %346 = vector.broadcast %cst_89 : f32 to vector<8x128xf32>
    %347 = arith.addf %346, %345 : vector<8x128xf32>
    %348 = arith.divf %346, %347 : vector<8x128xf32>
    %349 = math.tanh %343 : vector<8x128xf32>
    %350 = vector.extract_strided_slice %348 {offsets = [0, 0], sizes = [8, 32], strides = [1, 1]} : vector<8x128xf32> to vector<8x32xf32>
    %351 = vector.extract_strided_slice %348 {offsets = [0, 32], sizes = [8, 32], strides = [1, 1]} : vector<8x128xf32> to vector<8x32xf32>
    %352 = vector.extract_strided_slice %349 {offsets = [0, 64], sizes = [8, 32], strides = [1, 1]} : vector<8x128xf32> to vector<8x32xf32>
    %353 = vector.extract_strided_slice %348 {offsets = [0, 96], sizes = [8, 32], strides = [1, 1]} : vector<8x128xf32> to vector<8x32xf32>
    %354 = arith.mulf %351, %331 : vector<8x32xf32>
    %355 = arith.mulf %350, %352 : vector<8x32xf32>
    %356 = arith.addf %354, %355 : vector<8x32xf32>
    %357 = math.tanh %356 : vector<8x32xf32>
    %358 = arith.mulf %353, %357 : vector<8x32xf32>
    %359 = arith.truncf %358 : vector<8x32xf32> to vector<8x32xbf16>
    %360 = arith.index_cast %338 : i32 to index
    %c0_90 = arith.constant 0 : index
    %361 = vector.load %arg7[%360, %c0_90] : memref<64x32xbf16, #tpu.memory_space<vmem>>, vector<8x32xbf16>
    tpu.vector_store %arg7[%360, %c0_90], %359 {strides = array<i32>} : memref<64x32xbf16, #tpu.memory_space<vmem>>, vector<8x32xbf16>,
    %c7_i32_91 = arith.constant 7 : i32
    %c8_i32_92 = arith.constant 8 : i32
    %362 = arith.muli %c7_i32_91, %c8_i32_92 : i32
    %363 = tpu.assume_multiple %362, 8 : i32
    %364 = arith.index_cast %363 : i32 to index
    %c0_93 = arith.constant 0 : index
    %365 = vector.load %arg9[%364, %c0_93] : memref<64x128xf32, #tpu.memory_space<vmem>>, vector<8x128xf32>
    %366 = arith.truncf %358 : vector<8x32xf32> to vector<8x32xbf16>
    %cst_94 = arith.constant dense<0.000000e+00> : vector<8x128xf32>
    %367 = tpu.matmul %366, %186, %cst_94 {dimension_numbers = #tpu.dot_dimension_numbers<[1], [0], [0], [1], [0, 0, 1, 1], [], []>} : vector<8x32xbf16>, vector<32x128xbf16>, vector<8x128xf32> -> vector<8x128xf32>
    %368 = arith.addf %365, %367 : vector<8x128xf32>
    %369 = arith.negf %368 : vector<8x128xf32>
    %370 = math.exp %369 : vector<8x128xf32>
    %cst_95 = arith.constant 1.000000e+00 : f32
    %371 = vector.broadcast %cst_95 : f32 to vector<8x128xf32>
    %372 = arith.addf %371, %370 : vector<8x128xf32>
    %373 = arith.divf %371, %372 : vector<8x128xf32>
    %374 = math.tanh %368 : vector<8x128xf32>
    %375 = vector.extract_strided_slice %373 {offsets = [0, 0], sizes = [8, 32], strides = [1, 1]} : vector<8x128xf32> to vector<8x32xf32>
    %376 = vector.extract_strided_slice %373 {offsets = [0, 32], sizes = [8, 32], strides = [1, 1]} : vector<8x128xf32> to vector<8x32xf32>
    %377 = vector.extract_strided_slice %374 {offsets = [0, 64], sizes = [8, 32], strides = [1, 1]} : vector<8x128xf32> to vector<8x32xf32>
    %378 = vector.extract_strided_slice %373 {offsets = [0, 96], sizes = [8, 32], strides = [1, 1]} : vector<8x128xf32> to vector<8x32xf32>
    %379 = arith.mulf %376, %356 : vector<8x32xf32>
    %380 = arith.mulf %375, %377 : vector<8x32xf32>
    %381 = arith.addf %379, %380 : vector<8x32xf32>
    %382 = math.tanh %381 : vector<8x32xf32>
    %383 = arith.mulf %378, %382 : vector<8x32xf32>
    %384 = arith.truncf %383 : vector<8x32xf32> to vector<8x32xbf16>
    %385 = arith.index_cast %363 : i32 to index
    %c0_96 = arith.constant 0 : index
    %386 = vector.load %arg7[%385, %c0_96] : memref<64x32xbf16, #tpu.memory_space<vmem>>, vector<8x32xbf16>
    tpu.vector_store %arg7[%385, %c0_96], %384 {strides = array<i32>} : memref<64x32xbf16, #tpu.memory_space<vmem>>, vector<8x32xbf16>,
    %c8_i32_97 = arith.constant 8 : i32
    return
  }
  func.func @transform_0(%arg0: i32) -> (i32, i32) {
    %c0_i32 = arith.constant 0 : i32
    %c0_i32_0 = arith.constant 0 : i32
    %c0_i32_1 = arith.constant 0 : i32
    return %c0_i32, %c0_i32_0 : i32, i32
  }
  func.func @transform_1(%arg0: i32) -> (i32, i32) {
    %c0_i32 = arith.constant 0 : i32
    %c0_i32_0 = arith.constant 0 : i32
    %c0_i32_1 = arith.constant 0 : i32
    return %c0_i32, %c0_i32_0 : i32, i32
  }
  func.func @transform_2(%arg0: i32) -> (i32, i32) {
    %c0_i32 = arith.constant 0 : i32
    %c0_i32_0 = arith.constant 0 : i32
    %c0_i32_1 = arith.constant 0 : i32
    return %c0_i32, %c0_i32_0 : i32, i32
  }
  func.func @transform_3(%arg0: i32) -> (i32, i32) {
    %c0_i32 = arith.constant 0 : i32
    %c0_i32_0 = arith.constant 0 : i32
    %c0_i32_1 = arith.constant 0 : i32
    return %c0_i32, %c0_i32_0 : i32, i32
  }
  func.func @transform_4(%arg0: i32) -> (i32, i32) {
    %c0_i32 = arith.constant 0 : i32
    %c0_i32_0 = arith.constant 0 : i32
    %c0_i32_1 = arith.constant 0 : i32
    return %c0_i32, %c0_i32_0 : i32, i32
  }
  func.func @transform_5(%arg0: i32) -> (i32, i32) {
    %c0_i32 = arith.constant 0 : i32
    %c0_i32_0 = arith.constant 0 : i32
    %c0_i32_1 = arith.constant 0 : i32
    return %c0_i32, %c0_i32_0 : i32, i32
  }
  func.func @transform_6(%arg0: i32) -> (i32, i32) {
    %c0_i32 = arith.constant 0 : i32
    %c0_i32_0 = arith.constant 0 : i32
    %c0_i32_1 = arith.constant 0 : i32
    return %c0_i32, %c0_i32_0 : i32, i32
  }
}

module attributes {stable_mosaic.version = 11 : i64} {
  func.func @_epilogue_kernel(%arg0: i32, %arg1: i32, %arg2: memref<8x32xbf16, #tpu.memory_space<vmem>>, %arg3: memref<32x128xbf16, #tpu.memory_space<vmem>>, %arg4: memref<1x128xf32, #tpu.memory_space<vmem>>, %arg5: memref<8x128xf32, #tpu.memory_space<vmem>>, %arg6: memref<8x1xf32, #tpu.memory_space<vmem>>, %arg7: memref<8x1xf32, #tpu.memory_space<vmem>>) attributes {dimension_semantics = [#tpu.dimension_semantics<parallel>, #tpu.dimension_semantics<arbitrary>], iteration_bounds = array<i64: 8, 1>, scalar_prefetch = 0 : i64, scratch_operands = 2 : i64, tpu.core_type = #tpu.core_type<tc>, window_params = [{transform_indices = @transform_0, window_bounds = array<i64: 8, 32>}, {transform_indices = @transform_1, window_bounds = array<i64: 32, 128>}, {transform_indices = @transform_2, window_bounds = array<i64: 1, 128>}, {transform_indices = @transform_3, window_bounds = array<i64: 8, 128>}]} {
    %c0_i32 = arith.constant 0 : i32
    %0 = arith.cmpi eq, %arg1, %c0_i32 : i32
    %1 = arith.extui %0 : i1 to i32
    %c0_i32_0 = arith.constant 0 : i32
    %2 = arith.cmpi ne, %1, %c0_i32_0 : i32
    scf.if %2 {
      %cst_19 = arith.constant 0xFF800000 : f32
      %32 = vector.broadcast %cst_19 : f32 to vector<8x1xf32>
      %c0_20 = arith.constant 0 : index
      %c0_21 = arith.constant 0 : index
      %33 = vector.load %arg6[%c0_20, %c0_21] : memref<8x1xf32, #tpu.memory_space<vmem>>, vector<8x1xf32>
      tpu.vector_store %arg6[%c0_20, %c0_21], %32 {strides = array<i32>} : memref<8x1xf32, #tpu.memory_space<vmem>>, vector<8x1xf32>,
      %cst_22 = arith.constant 0.000000e+00 : f32
      %34 = vector.broadcast %cst_22 : f32 to vector<8x1xf32>
      %c0_23 = arith.constant 0 : index
      %c0_24 = arith.constant 0 : index
      %35 = vector.load %arg7[%c0_23, %c0_24] : memref<8x1xf32, #tpu.memory_space<vmem>>, vector<8x1xf32>
      tpu.vector_store %arg7[%c0_23, %c0_24], %34 {strides = array<i32>} : memref<8x1xf32, #tpu.memory_space<vmem>>, vector<8x1xf32>,
    } else {
    }
    %c0 = arith.constant 0 : index
    %c0_1 = arith.constant 0 : index
    %3 = vector.load %arg2[%c0, %c0_1] : memref<8x32xbf16, #tpu.memory_space<vmem>>, vector<8x32xbf16>
    %c0_2 = arith.constant 0 : index
    %c0_3 = arith.constant 0 : index
    %4 = vector.load %arg3[%c0_2, %c0_3] : memref<32x128xbf16, #tpu.memory_space<vmem>>, vector<32x128xbf16>
    %cst = arith.constant dense<0.000000e+00> : vector<8x128xf32>
    %5 = tpu.matmul %3, %4, %cst {dimension_numbers = #tpu.dot_dimension_numbers<[1], [0], [0], [1], [0, 0, 1, 1], [], []>} : vector<8x32xbf16>, vector<32x128xbf16>, vector<8x128xf32> -> vector<8x128xf32>
    %c0_4 = arith.constant 0 : index
    %c0_5 = arith.constant 0 : index
    %6 = vector.load %arg4[%c0_4, %c0_5] : memref<1x128xf32, #tpu.memory_space<vmem>>, vector<1x128xf32>
    %7 = vector.broadcast %6 : vector<1x128xf32> to vector<8x128xf32>
    %8 = arith.addf %5, %7 : vector<8x128xf32>
    %c0_6 = arith.constant 0 : index
    %c0_7 = arith.constant 0 : index
    %9 = vector.load %arg6[%c0_6, %c0_7] : memref<8x1xf32, #tpu.memory_space<vmem>>, vector<8x1xf32>
    %cst_8 = arith.constant dense<0xFF800000> : vector<8xf32>
    %10 = vector.multi_reduction <maximumf>, %8, %cst_8 [1] : vector<8x128xf32> to vector<8xf32>
    %11 = vector.shape_cast %10 : vector<8xf32> to vector<8x1xf32>
    %12 = arith.maximumf %9, %11 : vector<8x1xf32>
    %c0_9 = arith.constant 0 : index
    %c0_10 = arith.constant 0 : index
    %13 = vector.load %arg7[%c0_9, %c0_10] : memref<8x1xf32, #tpu.memory_space<vmem>>, vector<8x1xf32>
    %14 = arith.subf %9, %12 : vector<8x1xf32>
    %15 = math.exp %14 : vector<8x1xf32>
    %16 = arith.mulf %13, %15 : vector<8x1xf32>
    %17 = vector.broadcast %12 : vector<8x1xf32> to vector<8x128xf32>
    %18 = arith.subf %8, %17 : vector<8x128xf32>
    %19 = math.exp %18 : vector<8x128xf32>
    %cst_11 = arith.constant dense<0.000000e+00> : vector<8xf32>
    %20 = vector.multi_reduction <add>, %19, %cst_11 [1] : vector<8x128xf32> to vector<8xf32>
    %21 = vector.shape_cast %20 : vector<8xf32> to vector<8x1xf32>
    %22 = arith.addf %16, %21 : vector<8x1xf32>
    %c0_12 = arith.constant 0 : index
    %c0_13 = arith.constant 0 : index
    %23 = vector.load %arg7[%c0_12, %c0_13] : memref<8x1xf32, #tpu.memory_space<vmem>>, vector<8x1xf32>
    tpu.vector_store %arg7[%c0_12, %c0_13], %22 {strides = array<i32>} : memref<8x1xf32, #tpu.memory_space<vmem>>, vector<8x1xf32>,
    %c0_14 = arith.constant 0 : index
    %c0_15 = arith.constant 0 : index
    %24 = vector.load %arg6[%c0_14, %c0_15] : memref<8x1xf32, #tpu.memory_space<vmem>>, vector<8x1xf32>
    tpu.vector_store %arg6[%c0_14, %c0_15], %12 {strides = array<i32>} : memref<8x1xf32, #tpu.memory_space<vmem>>, vector<8x1xf32>,
    %c128_i32 = arith.constant 128 : i32
    %25 = arith.muli %arg1, %c128_i32 : i32
    %26 = tpu.assume_multiple %25, 128 : i32
    %c0_16 = arith.constant 0 : index
    %27 = arith.index_cast %26 : i32 to index
    %28 = vector.load %arg5[%c0_16, %27] : memref<8x128xf32, #tpu.memory_space<vmem>>, vector<8x128xf32>
    tpu.vector_store %arg5[%c0_16, %27], %8 {strides = array<i32>} : memref<8x128xf32, #tpu.memory_space<vmem>>, vector<8x128xf32>,
    %c0_i32_17 = arith.constant 0 : i32
    %29 = arith.cmpi eq, %arg1, %c0_i32_17 : i32
    %30 = arith.extui %29 : i1 to i32
    %c0_i32_18 = arith.constant 0 : i32
    %31 = arith.cmpi ne, %30, %c0_i32_18 : i32
    scf.if %31 {
      %c0_19 = arith.constant 0 : index
      %c0_20 = arith.constant 0 : index
      %32 = vector.load %arg6[%c0_19, %c0_20] : memref<8x1xf32, #tpu.memory_space<vmem>>, vector<8x1xf32>
      %c0_21 = arith.constant 0 : index
      %c0_22 = arith.constant 0 : index
      %33 = vector.load %arg7[%c0_21, %c0_22] : memref<8x1xf32, #tpu.memory_space<vmem>>, vector<8x1xf32>
      %34 = math.log %33 : vector<8x1xf32>
      %35 = arith.addf %32, %34 : vector<8x1xf32>
      %c0_23 = arith.constant 0 : index
      %c0_24 = arith.constant 0 : index
      %36 = vector.load %arg5[%c0_23, %c0_24] : memref<8x128xf32, #tpu.memory_space<vmem>>, vector<8x128xf32>
      %37 = vector.broadcast %35 : vector<8x1xf32> to vector<8x128xf32>
      %38 = arith.subf %36, %37 : vector<8x128xf32>
      %c0_25 = arith.constant 0 : index
      %c0_26 = arith.constant 0 : index
      %39 = vector.load %arg5[%c0_25, %c0_26] : memref<8x128xf32, #tpu.memory_space<vmem>>, vector<8x128xf32>
      tpu.vector_store %arg5[%c0_25, %c0_26], %38 {strides = array<i32>} : memref<8x128xf32, #tpu.memory_space<vmem>>, vector<8x128xf32>,
    } else {
    }
    return
  }
  func.func @transform_0(%arg0: i32, %arg1: i32) -> (i32, i32) {
    %c0_i32 = arith.constant 0 : i32
    %c0_i32_0 = arith.constant 0 : i32
    return %arg0, %c0_i32 : i32, i32
  }
  func.func @transform_1(%arg0: i32, %arg1: i32) -> (i32, i32) {
    %c0_i32 = arith.constant 0 : i32
    %c0_i32_0 = arith.constant 0 : i32
    return %c0_i32, %arg1 : i32, i32
  }
  func.func @transform_2(%arg0: i32, %arg1: i32) -> (i32, i32) {
    %c0_i32 = arith.constant 0 : i32
    %c0_i32_0 = arith.constant 0 : i32
    return %c0_i32, %arg1 : i32, i32
  }
  func.func @transform_3(%arg0: i32, %arg1: i32) -> (i32, i32) {
    %c0_i32 = arith.constant 0 : i32
    %c0_i32_0 = arith.constant 0 : i32
    return %arg0, %c0_i32 : i32, i32
  }
}

</mosaic_0001>

<bundles_post_ra>
// kernel: seq2seq_forward.3
= control target key start
LH: loop header
LB: loop body
LE: loop exit
PB: predicated region body
PF: predicated region fallthrough
CT: control target
= control target key end

     0   :  { %s531_s12 = smov 0   ;;  %s533_s13 = smov 0   ;;  %s581_s0 = inlined_call_operand.vmem [shape: bf16[64,32], index: 0, kind: input, shape index: {}]   ;;  %s582_s1 = inlined_call_operand.vmem [shape: bf16[32,128], index: 1, kind: input, shape index: {}]   ;;  %s583_s2 = inlined_call_operand.vmem [shape: f32[1,128], index: 2, kind: input, shape index: {}]   ;;  %s584_s3 = inlined_call_operand.vmem [shape: f32[64,128], index: 3, kind: output, shape index: {}]  }
   0x1   :  { %s535_s14 = smov 0  }
   0x2 LB: > { %s25_s15 = sadd.s32 1, %s501_s13  ;;  %p425_p0 = scmp.ge.s32.totalorder %s505_s14, 1  ;;  %s505_s14 = sphi %s535_s14, %s13_s14   ;;  %s501_s13 = sphi %s533_s13, %s586_s13   ;;  %s497_s12 = sphi %s531_s12, %s585_s12  }
   0x3   : > { %p27_p1 = scmp.ge.s32.totalorder %s25_s15, 8  ;;  %p165_p2 = scmp.lt.s32.totalorder %s505_s14, 9 }
   0x5   : > { %s588_s15 = smov (%p27_p1, %s25_s15), 0  ;;  %p166_p3 = pnand %p425_p0, %p165_p2 }
   0x6   : > { %vm214_vm0 = vcmask (!%p166_p3), 7168   ;;  %v507_v0 = vmov (!%p166_p3), 0.0   ;;  %v475_v1 = vld [vmem:[%s582_s1] sm:$0xff] (!%p166_p3)   ;;  %vm508_vm1 = vmmov (!%p166_p3), 0   ;;  %p194_p4 = scmp.lt.s32.totalorder (!%p166_p3), %s497_s12, 7  ;;  %v476_v2 = vld [vmem:[%s582_s1 + $0x8] sm:$0xff] (!%p166_p3)  }
   0x7   : > { %169 = sbr.rel (%p166_p3) target bundleno = 817 (0x331), region = 32  ;;  %216 = vst.msk [vmem:[#allocation3] sm:$0xff] (!%p166_p3), %vm214_vm0, %v507_v0  ;;  %437 = vmatprep.subr.bf16.mxu0 (!%p166_p3), %v507_v0  ;;  %441 = vmatprep.mubr.msk.bf16.mxu0 (!%p166_p3), %vm508_vm1, %v507_v0  ;;  %vm241_vm2 = vcmask (!%p166_p3), 261120   ;;  %v509_v4 = vmov (!%p166_p3), -inf   ;;  %v428_v5 = vld [vmem:[%s583_s2] ss:$0 sm:$0xff] (!%p166_p3) }
   0x8   : > { %438 = vmatpush3.bf16.msra.mxu0 (!%p166_p3), %v475_v1  ;;  %215 = vst.msk [vmem:[#allocation2] sm:$0xff] (!%p166_p3), %vm214_vm0, %v509_v4  ;;  %v510_v11 = vmov (!%p166_p3), 0  }
   0x9   : > { %439 = vmatprep.subr.bf16.mxu0 (!%p166_p3), %v507_v0  ;;  %473 = vset.pattern.permute.xlu0 (!%p166_p3), %v510_v11 }
   0xa   : > { %474 = vset.pattern.permute.xlu1 (!%p166_p3), %v510_v11 }
   0xc   : > { %440 = vmatpush3.bf16.msra.mxu0 (!%p166_p3), %v476_v2 }
   0xe   : > { %s590_s12 = smov (!%p194_p4, %s497_s12), 7  ;;  %v289_v22 = vld [vmem:[#allocation3] sm:$0xff] }
   0xf   : > { %s426_s20 = sshll.u32 %s590_s12, 2  ;;  %v285_v12 = vld [vmem:[#allocation2] sm:$0xff]  ;;  %s427_s26 = sshll.u32 %s590_s12, 3 }
  0x10   : > { %s197_s23 = scalar_lea.vmem %s581_s0, %s426_s20  ;;  %s208_s29 = scalar_lea.vmem %s584_s3, %s427_s26 }
  0x11   : > { %v217_v3 = vld [vmem:[%s197_s23] sm:$0xf] }
  0x12   : > { %442 = vmatmul.mubr.msk.bf16.vlgmr.msra.gmra.mrb[0].mxu0 %vm241_vm2, %v217_v3 }
  0xe5   : > { %v279_v6 = vpop.f32.mrb[0].mxu0 }
  0xe6   : > { %v280_v7 = vadd.f32 %v428_v5, %v279_v6  ;;  %v443_v8 = vpop.f32.mrb[1].mxu0 }
  0xe7   : > { %v282_v9 = vpop.f32.mrb[2].mxu0 }
  0xe8   : > { %286 = vmax.xlane.f32.xlu0 %v280_v7  ;;  %v444_v10 = vpop.f32.mrb[3].mxu0 }
 0x175   : > { %v287_v13 = vpop.xlane.xlu0 %286 }
 0x176   : > { %v288_v14 = vmax.f32 %v285_v12, %v287_v13 }
 0x178   : > { %v290_v15 = vsub.f32 %v285_v12, %v288_v14  ;;  %307 = vst.msk [vmem:[#allocation2] sm:$0xff] %vm214_vm0, %v288_v14  ;;  %296 = vperm.xlu0 %473, %v288_v14  }
 0x17a   : > { %v291_v20 = vmul.f32 1.442695, %v290_v15 }
 0x17f   : > { %v316_v29 = vld [vmem:[#allocation2] sm:$0xff] }
 0x1f7   : > { %v297_v16 = vpop.permute.xlu0 %296 }
 0x1f8   : > { %v299_v17 = vsub.f32 %v280_v7, %v297_v16 }
 0x1fa   : > { %v300_v18 = vmul.f32 1.442695, %v299_v17 }
 0x1fc   : > { %477 = vpow2.f32 %v300_v18 }
 0x1fd   : > { %479 = vpow2.f32 %v291_v20 }
 0x206   : > { %v478_v19 = vpop.eup %477 }
 0x207   : > { %302 = vadd.xlane.f32.xlu1 %v478_v19  ;;  %v480_v21 = vpop.eup %479 }
 0x208   : > { %v293_v23 = vmul.f32 %v480_v21, %v289_v22 }
 0x294   : > { %v303_v24 = vpop.xlane.xlu1 %302 }
 0x295   : > { %v304_v25 = vadd.f32 %v303_v24, %v293_v23 }
 0x297   : > { %306 = vst.msk [vmem:[#allocation3] sm:$0xff] %vm214_vm0, %v304_v25 }
 0x29e   : > { %v317_v26 = vld [vmem:[#allocation3] sm:$0xff] }
 0x29f   : > { %481 = vlog2.f32 %v317_v26 }
 0x2a9   : > { %v482_v27 = vpop.eup %481 }
 0x2aa   : > { %v319_v28 = vmul.f32 0.6931472, %v482_v27 }
 0x2ac   : > { %v320_v30 = vadd.f32 %v319_v28, %v316_v29 }
 0x2ae   : > { %324 = vperm.xlu1 %474, %v320_v30  }
 0x32d   : > { %v325_v31 = vpop.permute.xlu1 %324 }
 0x32e   : > { %v327_v32 = vsub.f32 %v280_v7, %v325_v31 }
 0x330   : > { %328 = vst [vmem:[%s208_s29] sm:$0xff] %v327_v32 }
 0x331 PF: > { %s13_s14 = sadd.s32 1, %s505_s14   ;;  %s585_s12 = smov %s501_s13 }
 0x332   : > { %p10_p5 = scmp.ge.s32.totalorder %s13_s14, 10   ;;  %s586_s13 = smov %s588_s15 }
 0x334   :  { %12 = sbr.rel (!%p10_p5) target bundleno = 2 (0x2), region = 77 }

// kernel: seq2seq_forward.2
= control target key start
LH: loop header
LB: loop body
LE: loop exit
PB: predicated region body
PF: predicated region fallthrough
CT: control target
= control target key end

     0   :  { %vm68_vm0 = vcmask 261120   ;;  %v1994_v7 = vmov 0.0   ;;  %vm1995_vm1 = vmmov 0   ;;  %v1996_v13 = vmov 0   ;;  %s1998_s18 = smov 32   ;;  %s2378_s4 = inlined_call_operand.vmem [shape: bf16[32,128], index: 4, kind: input, shape index: {}]   ;;  %s2379_s1 = inlined_call_operand.vmem [shape: bf16[64,32], index: 1, kind: input, shape index: {}]   ;;  %s2380_s2 = inlined_call_operand.vmem [shape: bf16[32,128], index: 2, kind: input, shape index: {}]   ;;  %s2381_s3 = inlined_call_operand.vmem [shape: bf16[32,128], index: 3, kind: input, shape index: {}]   ;;  %s2382_s0 = inlined_call_operand.vmem [shape: bf16[64,32], index: 0, kind: input, shape index: {}]   ;;  %s2383_s5 = inlined_call_operand.vmem [shape: bf16[32,128], index: 5, kind: input, shape index: {}]   ;;  %s2384_s6 = inlined_call_operand.vmem [shape: bf16[64,32], index: 6, kind: output, shape index: {}]  }
   0x1   :  { %v1850_v0 = vld [vmem:[%s2378_s4] sm:$0xff]   ;;  %v1851_v1 = vld [vmem:[%s2378_s4 + $0x8] sm:$0xff]   ;;  %v1856_v6 = vld [vmem:[%s2379_s1 + $0x10] sm:$0xff]   ;;  %vm982_vm2 = vcmask 257024  }
   0x2   :  { %1693 = vmatprep.subr.bf16.mxu0 %v1850_v0  ;;  %v1852_v2 = vld [vmem:[%s2379_s1] sm:$0xff]   ;;  %v1853_v3 = vld [vmem:[%s2379_s1 + $0x8] sm:$0xff]   ;;  %v1857_v12 = vld [vmem:[%s2379_s1 + $0x18] sm:$0xff]   ;;  %s1997_s1 = smov 64  }
   0x3   :  { %1694 = vmatpush3.bf16.msra.mxu0 %v1850_v0  ;;  %1697 = vmatprep.mubr.msk.bf16.mxu0 %vm68_vm0, %v1852_v2  ;;  %v1855_v4 = vld [vmem:[%s2380_s2] sm:$0xff]   ;;  %v1858_v8 = vld [vmem:[%s2380_s2 + $0x8] sm:$0xff]   ;;  %v1862_v41 = vld [vmem:[%s2382_s0 + $0x10] sm:$0xff]  }
   0x4   :  { %1695 = vmatprep.subr.bf16.mxu0 %v1851_v1  ;;  %v2053_v5 = vld [vmem:[%s2381_s3] sm:$0xff]   ;;  %1705 = vmatprep.subr.bf16.mxu1 %v1855_v4  ;;  %v2065_v9 = vld [vmem:[%s2381_s3 + $0x8] sm:$0xff]   ;;  %v1863_v42 = vld [vmem:[%s2382_s0 + $0x18] sm:$0xff]  }
   0x5   :  { %1706 = vmatpush3.bf16.msra.mxu1 %v1855_v4  ;;  %v1860_v10 = vld [vmem:[%s2382_s0] sm:$0xff]   ;;  %v1861_v11 = vld [vmem:[%s2382_s0 + $0x8] sm:$0xff]  }
   0x6   :  { %1707 = vmatprep.subr.bf16.mxu1 %v1858_v8  ;;  %1709 = vmatprep.mubr.msk.bf16.mxu1 %vm68_vm0, %v1860_v10 }
   0x7   :  { %1696 = vmatpush3.bf16.msra.mxu0 %v1851_v1 }
   0x8   :  { %1717 = vmatprep.subr.bf16.mxu0 %v1994_v7 }
   0x9   :  { %1708 = vmatpush3.bf16.msra.mxu1 %v1858_v8 }
   0xa   :  { %1698 = vmatmul.mubr.msk.bf16.vlgmr.msra.gmra.mrb[0].mxu0 %vm68_vm0, %v1853_v3  ;;  %1725 = vmatprep.subr.bf16.mxu1 %v1994_v7 }
   0xb   :  { %1718 = vmatpush3.bf16.msra.mxu0 %v2053_v5  ;;  %1701 = vmatprep.mubr.msk.bf16.mxu0 %vm68_vm0, %v1856_v6 }
   0xc   :  { %1719 = vmatprep.subr.bf16.mxu0 %v1994_v7  ;;  %1710 = vmatmul.mubr.msk.bf16.vlgmr.msra.gmra.mrb[0].mxu1 %vm68_vm0, %v1861_v11 }
   0xd   :  { %1726 = vmatpush3.bf16.msra.mxu1 %v2053_v5  ;;  %1713 = vmatprep.mubr.msk.bf16.mxu1 %vm68_vm0, %v1862_v41 }
   0xe   :  { %1727 = vmatprep.subr.bf16.mxu1 %v1994_v7 }
   0xf   :  { %1720 = vmatpush3.bf16.msra.mxu0 %v2065_v9 }
  0x10   :  { %1733 = vmatprep.subr.bf16.mxu0 %v1994_v7 }
  0x11   :  { %1728 = vmatpush3.bf16.msra.mxu1 %v2065_v9 }
  0x12   :  { %1702 = vmatmul.mubr.msk.bf16.gmra.mrb[4].mxu0 %vm68_vm0, %v1857_v12  ;;  %1741 = vmatprep.subr.bf16.mxu1 %v1994_v7 }
  0x13   :  { %1721 = vmatprep.mubr.msk.bf16.mxu0 %vm1995_vm1, %v1994_v7 }
  0x14   :  { %1714 = vmatmul.mubr.msk.bf16.gmra.mrb[4].mxu1 %vm68_vm0, %v1863_v42 }
  0x15   :  { %1729 = vmatprep.mubr.msk.bf16.mxu1 %vm1995_vm1, %v1994_v7 }
  0x1a   :  { %1722 = vmatmul.mubr.bf16.vlgmr.msra.gmra.mrb[8].mxu0 %v1996_v13 }
  0x1b   :  { %1734 = vmatpush3.bf16.msra.mxu0 %v2053_v5  ;;  %1737 = vmatprep.mubr.msk.bf16.mxu0 %vm1995_vm1, %v1994_v7 }
  0x1c   :  { %1735 = vmatprep.subr.bf16.mxu0 %v1994_v7 }
  0x1f   :  { %1736 = vmatpush3.bf16.msra.mxu0 %v2065_v9 }
  0x20   :  { %1749 = vmatprep.subr.bf16.mxu0 %v1994_v7 }
  0xdd   :  { %v2098_v14 = vpop.f32.mrb[0].mxu0 }
  0xde   :  { %v2100_v15 = vpop.f32.mrb[1].mxu0 }
  0xdf   :  { %v2102_v16 = vpop.f32.mrb[2].mxu0  ;;  %v2106_v18 = vpop.f32.mrb[0].mxu1 }
  0xe0   :  { %v2104_v17 = vpop.f32.mrb[3].mxu0  ;;  %v244_v19 = vpop.f32.mrb[1].mxu1 }
  0xe1   :  { %v2108_v20 = vpop.f32.mrb[2].mxu1 }
  0xe2   :  { %v247_v22 = vpop.f32.mrb[3].mxu1 }
  0xe5   :  { %v2110_v21 = vpop.f32.mrb[4].mxu0 }
  0xe6   :  { %v2112_v23 = vpop.f32.mrb[5].mxu0 }
  0xe7   :  { %v2114_v24 = vpop.f32.mrb[6].mxu0  ;;  %v2132_v47 = vpop.f32.mrb[4].mxu1 }
  0xe8   :  { %v2116_v25 = vpop.f32.mrb[7].mxu0  ;;  %v2134_v48 = vpop.f32.mrb[5].mxu1 }
  0xe9   :  { %v2136_v49 = vpop.f32.mrb[6].mxu1 }
  0xea   :  { %v2138_v50 = vpop.f32.mrb[7].mxu1 }
  0xed   :  { %v337_v26 = vpop.f32.mrb[8].mxu0 }
  0xee   :  { %v343_v27 = vadd.f32 %v337_v26, %v244_v19  ;;  %v1723_v28 = vpop.f32.mrb[9].mxu0 }
  0xef   :  { %v340_v29 = vpop.f32.mrb[10].mxu0 }
  0xf0   :  { %1866 = vtanh.f32 %v343_v27  ;;  %v1724_v30 = vpop.f32.mrb[11].mxu0  ;;  %v1577_v32 = vmul.f32 -1.442695, %v343_v27 }
  0xf2   :  { %1868 = vpow2.f32 %v1577_v32 }
  0xfa   :  { %v1867_v31 = vpop.eup %1866 }
  0xfb   :  { %353 = vrot.lane.b32.xlu0 %v1867_v31, %s1997_s1 }
  0xfc   :  { %v1869_v33 = vpop.eup %1868 }
  0xfd   :  { %v347_v34 = vadd.f32 1.0, %v1869_v33 }
  0xff   :  { %1870 = vrcp.f32 %v347_v34 }
 0x109   :  { %v1871_v35 = vpop.eup %1870 }
 0x10a   :  { %v351_v38 = vmul.f32 0.0, %v1871_v35 }
 0x16d   :  { %v354_v36 = vpop.permute.xlu0 %353 }
 0x16e   :  { %v356_v37 = vmul.f32 %v1871_v35, %v354_v36 }
 0x170   :  { %358 = vrot.lane.b32.xlu0 %v356_v37, %s1998_s18 }
 0x1e2   :  { %v359_v39 = vpop.permute.xlu0 %358 }
 0x1e3   :  { %v361_v40 = vadd.f32 %v359_v39, %v351_v38 }
 0x1e5   :  { %1872 = vtanh.f32 %v361_v40 }
 0x1ef   :  { %v1873_v43 = vpop.eup %1872 }
 0x1f0   :  { %364 = vrot.lane.b32.xlu1 %v1873_v43, %s1997_s1 }
 0x262   :  { %v365_v44 = vpop.permute.xlu1 %364 }
 0x263   :  { %v367_v45 = vmul.f32 %v1871_v35, %v365_v44 }
 0x265   :  { %v370_v46 = vpack.c.bf16 %v367_v45, %v367_v45 }
 0x267   :  { %372 = vrot.lane.b32.xlu1 %v370_v46, %s1998_s18 }
 0x2d9   :  { %v373_v51 = vpop.permute.xlu1 %372 }
 0x2da   :  { %1730 = vmatmul.mubr.msk.bf16.vlgmr.msra.gmra.mrb[8].mxu1 %vm68_vm0, %v373_v51 }
 0x2db   :  { %1742 = vmatpush3.bf16.msra.mxu1 %v2053_v5  ;;  %1745 = vmatprep.mubr.msk.bf16.mxu1 %vm1995_vm1, %v1994_v7 }
 0x2dc   :  { %1743 = vmatprep.subr.bf16.mxu1 %v1994_v7 }
 0x2df   :  { %1744 = vmatpush3.bf16.msra.mxu1 %v2065_v9 }
 0x2e0   :  { %1757 = vmatprep.subr.bf16.mxu1 %v1994_v7 }
 0x3ad   :  { %v411_v52 = vpop.f32.mrb[8].mxu1 }
 0x3ae   :  { %v417_v53 = vadd.f32 %v411_v52, %v247_v22  ;;  %v1731_v54 = vpop.f32.mrb[9].mxu1 }
 0x3af   :  { %v414_v55 = vpop.f32.mrb[10].mxu1 }
 0x3b0   :  { %1874 = vtanh.f32 %v417_v53  ;;  %v1732_v56 = vpop.f32.mrb[11].mxu1  ;;  %v1579_v58 = vmul.f32 -1.442695, %v417_v53 }
 0x3b2   :  { %1876 = vpow2.f32 %v1579_v58 }
 0x3ba   :  { %v1875_v57 = vpop.eup %1874 }
 0x3bb   :  { %427 = vrot.lane.b32.xlu0 %v1875_v57, %s1997_s1 }
 0x3bc   :  { %v1877_v59 = vpop.eup %1876 }
 0x3bd   :  { %v421_v60 = vadd.f32 1.0, %v1877_v59 }
 0x3bf   :  { %1878 = vrcp.f32 %v421_v60 }
 0x3c9   :  { %v1879_v61 = vpop.eup %1878 }
 0x3ca   :  { %v425_v0 = vmul.f32 %v1879_v61, %v361_v40 }
 0x42d   :  { %v428_v62 = vpop.permute.xlu0 %427 }
 0x42e   :  { %v430_v63 = vmul.f32 %v1879_v61, %v428_v62 }
 0x430   :  { %432 = vrot.lane.b32.xlu1 %v430_v63, %s1998_s18 }
 0x4a2   :  { %v433_v1 = vpop.permute.xlu1 %432 }
 0x4a3   :  { %v435_v2 = vadd.f32 %v433_v1, %v425_v0 }
 0x4a5   :  { %1880 = vtanh.f32 %v435_v2 }
 0x4af   :  { %v1881_v3 = vpop.eup %1880 }
 0x4b0   :  { %438 = vrot.lane.b32.xlu0 %v1881_v3, %s1997_s1 }
 0x522   :  { %v439_v4 = vpop.permute.xlu0 %438 }
 0x523   :  { %v441_v6 = vmul.f32 %v1879_v61, %v439_v4 }
 0x525   :  { %v444_v8 = vpack.c.bf16 %v441_v6, %v441_v6 }
 0x527   :  { %446 = vrot.lane.b32.xlu1 %v444_v8, %s1998_s18 }
 0x599   :  { %v447_v10 = vpop.permute.xlu1 %446 }
 0x59a   :  { %1738 = vmatmul.mubr.msk.bf16.vlgmr.msra.gmra.mrb[12].mxu0 %vm68_vm0, %v447_v10 }
 0x59b   :  { %1750 = vmatpush3.bf16.msra.mxu0 %v2053_v5  ;;  %1753 = vmatprep.mubr.msk.bf16.mxu0 %vm1995_vm1, %v1994_v7 }
 0x59c   :  { %1751 = vmatprep.subr.bf16.mxu0 %v1994_v7 }
 0x59f   :  { %1752 = vmatpush3.bf16.msra.mxu0 %v2065_v9 }
 0x5a0   :  { %1765 = vmatprep.subr.bf16.mxu0 %v1994_v7 }
 0x66d   :  { %v485_v11 = vpop.f32.mrb[12].mxu0 }
 0x66e   :  { %v491_v12 = vadd.f32 %v2106_v18, %v485_v11  ;;  %v1739_v13 = vpop.f32.mrb[13].mxu0 }
 0x66f   :  { %v488_v19 = vpop.f32.mrb[14].mxu0 }
 0x670   :  { %1882 = vtanh.f32 %v491_v12  ;;  %v1740_v22 = vpop.f32.mrb[15].mxu0  ;;  %v1581_v27 = vmul.f32 -1.442695, %v491_v12 }
 0x672   :  { %1884 = vpow2.f32 %v1581_v27 }
 0x67a   :  { %v1883_v26 = vpop.eup %1882 }
 0x67b   :  { %501 = vrot.lane.b32.xlu0 %v1883_v26, %s1997_s1 }
 0x67c   :  { %v1885_v28 = vpop.eup %1884 }
 0x67d   :  { %v495_v29 = vadd.f32 1.0, %v1885_v28 }
 0x67f   :  { %1886 = vrcp.f32 %v495_v29 }
 0x689   :  { %v1887_v30 = vpop.eup %1886 }
 0x68a   :  { %v499_v33 = vmul.f32 %v1887_v30, %v435_v2 }
 0x6ed   :  { %v502_v31 = vpop.permute.xlu0 %501 }
 0x6ee   :  { %v504_v32 = vmul.f32 %v1887_v30, %v502_v31 }
 0x6f0   :  { %506 = vrot.lane.b32.xlu1 %v504_v32, %s1998_s18 }
 0x762   :  { %v507_v34 = vpop.permute.xlu1 %506 }
 0x763   :  { %v509_v18 = vadd.f32 %v507_v34, %v499_v33 }
 0x765   :  { %1888 = vtanh.f32 %v509_v18 }
 0x76f   :  { %v1889_v35 = vpop.eup %1888 }
 0x770   :  { %512 = vrot.lane.b32.xlu0 %v1889_v35, %s1997_s1 }
 0x7e2   :  { %v513_v36 = vpop.permute.xlu0 %512 }
 0x7e3   :  { %v515_v37 = vmul.f32 %v1887_v30, %v513_v36 }
 0x7e5   :  { %v518_v38 = vpack.c.bf16 %v515_v37, %v515_v37 }
 0x7e7   :  { %520 = vrot.lane.b32.xlu1 %v518_v38, %s1998_s18 }
 0x859   :  { %v521_v39 = vpop.permute.xlu1 %520 }
 0x85a   :  { %1746 = vmatmul.mubr.msk.bf16.vlgmr.msra.gmra.mrb[12].mxu1 %vm68_vm0, %v521_v39 }
 0x85b   :  { %1758 = vmatpush3.bf16.msra.mxu1 %v2053_v5  ;;  %1761 = vmatprep.mubr.msk.bf16.mxu1 %vm1995_vm1, %v1994_v7 }
 0x85c   :  { %1759 = vmatprep.subr.bf16.mxu1 %v1994_v7 }
 0x85f   :  { %1760 = vmatpush3.bf16.msra.mxu1 %v2065_v9 }
 0x860   :  { %1773 = vmatprep.subr.bf16.mxu1 %v1994_v7 }
 0x92d   :  { %v559_v40 = vpop.f32.mrb[12].mxu1 }
 0x92e   :  { %v565_v41 = vadd.f32 %v2108_v20, %v559_v40  ;;  %v1747_v42 = vpop.f32.mrb[13].mxu1 }
 0x92f   :  { %v562_v43 = vpop.f32.mrb[14].mxu1 }
 0x930   :  { %1890 = vtanh.f32 %v565_v41  ;;  %v1748_v44 = vpop.f32.mrb[15].mxu1  ;;  %v1583_v46 = vmul.f32 -1.442695, %v565_v41 }
 0x932   :  { %1892 = vpow2.f32 %v1583_v46 }
 0x93a   :  { %v1891_v45 = vpop.eup %1890 }
 0x93b   :  { %575 = vrot.lane.b32.xlu0 %v1891_v45, %s1997_s1 }
 0x93c   :  { %v1893_v51 = vpop.eup %1892 }
 0x93d   :  { %v569_v52 = vadd.f32 1.0, %v1893_v51 }
 0x93f   :  { %1894 = vrcp.f32 %v569_v52 }
 0x949   :  { %v1895_v53 = vpop.eup %1894 }
 0x94a   :  { %v573_v56 = vmul.f32 %v1895_v53, %v509_v18 }
 0x9ad   :  { %v576_v54 = vpop.permute.xlu0 %575 }
 0x9ae   :  { %v578_v55 = vmul.f32 %v1895_v53, %v576_v54 }
 0x9b0   :  { %580 = vrot.lane.b32.xlu1 %v578_v55, %s1998_s18 }
 0xa22   :  { %v581_v57 = vpop.permute.xlu1 %580 }
 0xa23   :  { %v583_v20 = vadd.f32 %v581_v57, %v573_v56 }
 0xa25   :  { %1896 = vtanh.f32 %v583_v20 }
 0xa2f   :  { %v1897_v58 = vpop.eup %1896 }
 0xa30   :  { %586 = vrot.lane.b32.xlu0 %v1897_v58, %s1997_s1 }
 0xaa2   :  { %v587_v59 = vpop.permute.xlu0 %586 }
 0xaa3   :  { %v589_v60 = vmul.f32 %v1895_v53, %v587_v59 }
 0xaa5   :  { %v592_v61 = vpack.c.bf16 %v589_v60, %v589_v60 }
 0xaa7   :  { %594 = vrot.lane.b32.xlu1 %v592_v61, %s1998_s18 }
 0xb19   :  { %v595_v62 = vpop.permute.xlu1 %594 }
 0xb1a   :  { %1754 = vmatmul.mubr.msk.bf16.vlgmr.msra.gmra.mrb[16].mxu0 %vm68_vm0, %v595_v62 }
 0xb1b   :  { %1766 = vmatpush3.bf16.msra.mxu0 %v2053_v5  ;;  %1769 = vmatprep.mubr.msk.bf16.mxu0 %vm1995_vm1, %v1994_v7 }
 0xb1c   :  { %1767 = vmatprep.subr.bf16.mxu0 %v1994_v7 }
 0xb1f   :  { %1768 = vmatpush3.bf16.msra.mxu0 %v2065_v9 }
 0xb20   :  { %1781 = vmatprep.subr.bf16.mxu0 %v1994_v7 }
 0xbed   :  { %v633_v63 = vpop.f32.mrb[16].mxu0 }
 0xbee   :  { %v639_v0 = vadd.f32 %v633_v63, %v2134_v48  ;;  %v1755_v1 = vpop.f32.mrb[17].mxu0 }
 0xbef   :  { %v636_v2 = vpop.f32.mrb[18].mxu0 }
 0xbf0   :  { %1898 = vtanh.f32 %v639_v0  ;;  %v1756_v3 = vpop.f32.mrb[19].mxu0  ;;  %v1585_v6 = vmul.f32 -1.442695, %v639_v0 }
 0xbf2   :  { %1900 = vpow2.f32 %v1585_v6 }
 0xbfa   :  { %v1899_v4 = vpop.eup %1898 }
 0xbfb   :  { %649 = vrot.lane.b32.xlu0 %v1899_v4, %s1997_s1 }
 0xbfc   :  { %v1901_v8 = vpop.eup %1900 }
 0xbfd   :  { %v643_v10 = vadd.f32 1.0, %v1901_v8 }
 0xbff   :  { %1902 = vrcp.f32 %v643_v10 }
 0xc09   :  { %v1903_v11 = vpop.eup %1902 }
 0xc0a   :  { %v647_v19 = vmul.f32 %v1903_v11, %v583_v20 }
 0xc6d   :  { %v650_v12 = vpop.permute.xlu0 %649 }
 0xc6e   :  { %v652_v13 = vmul.f32 %v1903_v11, %v650_v12 }
 0xc70   :  { %654 = vrot.lane.b32.xlu1 %v652_v13, %s1998_s18 }
 0xce2   :  { %v655_v22 = vpop.permute.xlu1 %654 }
 0xce3   :  { %v657_v48 = vadd.f32 %v655_v22, %v647_v19 }
 0xce5   :  { %1904 = vtanh.f32 %v657_v48 }
 0xcef   :  { %v1905_v26 = vpop.eup %1904 }
 0xcf0   :  { %660 = vrot.lane.b32.xlu0 %v1905_v26, %s1997_s1 }
 0xd62   :  { %v661_v27 = vpop.permute.xlu0 %660 }
 0xd63   :  { %v663_v28 = vmul.f32 %v1903_v11, %v661_v27 }
 0xd65   :  { %v666_v29 = vpack.c.bf16 %v663_v28, %v663_v28 }
 0xd67   :  { %668 = vrot.lane.b32.xlu1 %v666_v29, %s1998_s18 }
 0xdd9   :  { %v669_v30 = vpop.permute.xlu1 %668 }
 0xdda   :  { %1762 = vmatmul.mubr.msk.bf16.vlgmr.msra.gmra.mrb[16].mxu1 %vm68_vm0, %v669_v30 }
 0xddb   :  { %1774 = vmatpush3.bf16.msra.mxu1 %v2053_v5  ;;  %1777 = vmatprep.mubr.msk.bf16.mxu1 %vm1995_vm1, %v1994_v7 }
 0xddc   :  { %1775 = vmatprep.subr.bf16.mxu1 %v1994_v7 }
 0xddf   :  { %1776 = vmatpush3.bf16.msra.mxu1 %v2065_v9 }
 0xde0   :  { %1789 = vmatprep.subr.bf16.mxu1 %v1994_v7 }
 0xead   :  { %v707_v31 = vpop.f32.mrb[16].mxu1 }
 0xeae   :  { %v713_v32 = vadd.f32 %v707_v31, %v2138_v50  ;;  %v1763_v33 = vpop.f32.mrb[17].mxu1  ;;  %v2216_v31 = vld [vmem:[%s2383_s5] sm:$0xff]  }
 0xeaf   :  { %v710_v34 = vpop.f32.mrb[18].mxu1 }
 0xeb0   :  { %1906 = vtanh.f32 %v713_v32  ;;  %v1764_v18 = vpop.f32.mrb[19].mxu1  ;;  %v1587_v5 = vmul.f32 -1.442695, %v713_v32  ;;  %v2222_v32 = vld [vmem:[%s2383_s5 + $0x8] sm:$0xff]  }
 0xeb2   :  { %1908 = vpow2.f32 %v1587_v5 }
 0xeba   :  { %v1907_v35 = vpop.eup %1906 }
 0xebb   :  { %723 = vrot.lane.b32.xlu0 %v1907_v35, %s1997_s1 }
 0xebc   :  { %v1909_v36 = vpop.eup %1908 }
 0xebd   :  { %v717_v37 = vadd.f32 1.0, %v1909_v36 }
 0xebf   :  { %1910 = vrcp.f32 %v717_v37 }
 0xec9   :  { %v1911_v38 = vpop.eup %1910 }
 0xeca   :  { %v721_v40 = vmul.f32 %v1911_v38, %v657_v48 }
 0xf2d   :  { %v724_v39 = vpop.permute.xlu0 %723 }
 0xf2e   :  { %v726_v9 = vmul.f32 %v1911_v38, %v724_v39 }
 0xf30   :  { %728 = vrot.lane.b32.xlu1 %v726_v9, %s1998_s18 }
 0xfa2   :  { %v729_v41 = vpop.permute.xlu1 %728 }
 0xfa3   :  { %v731_v50 = vadd.f32 %v729_v41, %v721_v40 }
 0xfa5   :  { %1912 = vtanh.f32 %v731_v50 }
 0xfaf   :  { %v1913_v42 = vpop.eup %1912 }
 0xfb0   :  { %734 = vrot.lane.b32.xlu0 %v1913_v42, %s1997_s1 }
0x1022   :  { %v735_v43 = vpop.permute.xlu0 %734 }
0x1023   :  { %v737_v44 = vmul.f32 %v1911_v38, %v735_v43 }
0x1025   :  { %v740_v45 = vpack.c.bf16 %v737_v44, %v737_v44 }
0x1027   :  { %742 = vrot.lane.b32.xlu1 %v740_v45, %s1998_s18 }
0x1099   :  { %v743_v46 = vpop.permute.xlu1 %742 }
0x109a   :  { %1770 = vmatmul.mubr.msk.bf16.vlgmr.msra.gmra.mrb[20].mxu0 %vm68_vm0, %v743_v46 }
0x109b   :  { %1785 = vmatprep.mubr.msk.bf16.mxu0 %vm1995_vm1, %v1994_v7  ;;  %1782 = vmatpush3.bf16.msra.mxu0 %v2216_v31 }
0x109c   :  { %1783 = vmatprep.subr.bf16.mxu0 %v1994_v7 }
0x109f   :  { %1784 = vmatpush3.bf16.msra.mxu0 %v2222_v32 }
0x10a0   :  { %1797 = vmatprep.subr.bf16.mxu0 %v1994_v7 }
0x116d   :  { %v781_v51 = vpop.f32.mrb[20].mxu0 }
0x116e   :  { %v787_v52 = vadd.f32 %v2132_v47, %v781_v51  ;;  %v1771_v53 = vpop.f32.mrb[21].mxu0 }
0x116f   :  { %v784_v54 = vpop.f32.mrb[22].mxu0 }
0x1170   :  { %1914 = vtanh.f32 %v787_v52  ;;  %v1772_v55 = vpop.f32.mrb[23].mxu0  ;;  %v1589_v57 = vmul.f32 -1.442695, %v787_v52 }
0x1172   :  { %1916 = vpow2.f32 %v1589_v57 }
0x117a   :  { %v1915_v56 = vpop.eup %1914 }
0x117b   :  { %797 = vrot.lane.b32.xlu0 %v1915_v56, %s1997_s1 }
0x117c   :  { %v1917_v20 = vpop.eup %1916 }
0x117d   :  { %v791_v58 = vadd.f32 1.0, %v1917_v20 }
0x117f   :  { %1918 = vrcp.f32 %v791_v58 }
0x1189   :  { %v1919_v59 = vpop.eup %1918 }
0x118a   :  { %v795_v62 = vmul.f32 %v1919_v59, %v731_v50 }
0x11ed   :  { %v798_v60 = vpop.permute.xlu0 %797 }
0x11ee   :  { %v800_v61 = vmul.f32 %v1919_v59, %v798_v60 }
0x11f0   :  { %802 = vrot.lane.b32.xlu1 %v800_v61, %s1998_s18 }
0x1262   :  { %v803_v63 = vpop.permute.xlu1 %802 }
0x1263   :  { %v805_v47 = vadd.f32 %v803_v63, %v795_v62 }
0x1265   :  { %1920 = vtanh.f32 %v805_v47 }
0x126f   :  { %v1921_v0 = vpop.eup %1920 }
0x1270   :  { %808 = vrot.lane.b32.xlu0 %v1921_v0, %s1997_s1 }
0x12e2   :  { %v809_v1 = vpop.permute.xlu0 %808 }
0x12e3   :  { %v811_v2 = vmul.f32 %v1919_v59, %v809_v1 }
0x12e5   :  { %v814_v3 = vpack.c.bf16 %v811_v2, %v811_v2 }
0x12e7   :  { %816 = vrot.lane.b32.xlu1 %v814_v3, %s1998_s18 }
0x1359   :  { %v817_v4 = vpop.permute.xlu1 %816 }
0x135a   :  { %1778 = vmatmul.mubr.msk.bf16.vlgmr.msra.gmra.mrb[20].mxu1 %vm68_vm0, %v817_v4 }
0x135b   :  { %1793 = vmatprep.mubr.msk.bf16.mxu1 %vm1995_vm1, %v1994_v7  ;;  %1790 = vmatpush3.bf16.msra.mxu1 %v2216_v31 }
0x135c   :  { %1791 = vmatprep.subr.bf16.mxu1 %v1994_v7 }
0x135f   :  { %1792 = vmatpush3.bf16.msra.mxu1 %v2222_v32 }
0x1360   :  { %1805 = vmatprep.subr.bf16.mxu1 %v1994_v7 }
0x142d   :  { %v855_v6 = vpop.f32.mrb[20].mxu1 }
0x142e   :  { %v861_v8 = vadd.f32 %v2136_v49, %v855_v6  ;;  %v1779_v10 = vpop.f32.mrb[21].mxu1 }
0x142f   :  { %v858_v11 = vpop.f32.mrb[22].mxu1 }
0x1430   :  { %1922 = vtanh.f32 %v861_v8  ;;  %v1780_v12 = vpop.f32.mrb[23].mxu1  ;;  %v1591_v19 = vmul.f32 -1.442695, %v861_v8 }
0x1432   :  { %1924 = vpow2.f32 %v1591_v19 }
0x143a   :  { %v1923_v13 = vpop.eup %1922 }
0x143b   :  { %871 = vrot.lane.b32.xlu0 %v1923_v13, %s1997_s1 }
0x143c   :  { %v1925_v22 = vpop.eup %1924 }
0x143d   :  { %v865_v48 = vadd.f32 1.0, %v1925_v22 }
0x143f   :  { %1926 = vrcp.f32 %v865_v48 }
0x1449   :  { %v1927_v26 = vpop.eup %1926 }
0x144a   :  { %v869_v29 = vmul.f32 %v1927_v26, %v805_v47 }
0x14ad   :  { %v872_v27 = vpop.permute.xlu0 %871 }
0x14ae   :  { %v874_v28 = vmul.f32 %v1927_v26, %v872_v27 }
0x14b0   :  { %876 = vrot.lane.b32.xlu1 %v874_v28, %s1998_s18 }
0x1522   :  { %v877_v30 = vpop.permute.xlu1 %876 }
0x1523   :  { %v879_v49 = vadd.f32 %v877_v30, %v869_v29 }
0x1525   :  { %1928 = vtanh.f32 %v879_v49 }
0x152f   :  { %v1929_v33 = vpop.eup %1928 }
0x1530   :  { %882 = vrot.lane.b32.xlu0 %v1929_v33, %s1997_s1 }
0x15a2   :  { %v883_v34 = vpop.permute.xlu0 %882 }
0x15a3   :  { %v885_v18 = vmul.f32 %v1927_v26, %v883_v34 }
0x15a5   :  { %v891_v35 = vpack.c.bf16 %v885_v18, %v885_v18 }
0x15a7   :  { %893 = vrot.lane.b32.xlu1 %v891_v35, %s1998_s18 }
0x1619   :  { %v894_v5 = vpop.permute.xlu1 %893 }
0x161a   :  { %1786 = vmatmul.mubr.msk.bf16.vlgmr.msra.gmra.mrb[24].mxu0 %vm68_vm0, %v894_v5 }
0x161b   :  { %1798 = vmatpush3.bf16.msra.mxu0 %v2216_v31  ;;  %1801 = vmatprep.mubr.msk.bf16.mxu0 %vm1995_vm1, %v1994_v7 }
0x161c   :  { %1799 = vmatprep.subr.bf16.mxu0 %v1994_v7 }
0x161f   :  { %1800 = vmatpush3.bf16.msra.mxu0 %v2222_v32 }
0x1620   :  { %1813 = vmatprep.subr.bf16.mxu0 %v1994_v7 }
0x16ed   :  { %v944_v36 = vpop.f32.mrb[24].mxu0 }
0x16ee   :  { %v950_v37 = vadd.f32 %v944_v36, %v2100_v15  ;;  %v1787_v38 = vpop.f32.mrb[25].mxu0 }
0x16ef   :  { %v947_v39 = vpop.f32.mrb[26].mxu0 }
0x16f0   :  { %1930 = vtanh.f32 %v950_v37  ;;  %v1788_v9 = vpop.f32.mrb[27].mxu0  ;;  %v1595_v41 = vmul.f32 -1.442695, %v950_v37 }
0x16f2   :  { %1932 = vpow2.f32 %v1595_v41 }
0x16fa   :  { %v1931_v40 = vpop.eup %1930 }
0x16fb   :  { %960 = vrot.lane.b32.xlu0 %v1931_v40, %s1997_s1 }
0x16fc   :  { %v1933_v50 = vpop.eup %1932 }
0x16fd   :  { %v954_v42 = vadd.f32 1.0, %v1933_v50 }
0x16ff   :  { %1934 = vrcp.f32 %v954_v42 }
0x1709   :  { %v1935_v43 = vpop.eup %1934 }
0x170a   :  { %v958_v46 = vmul.f32 %v1935_v43, %v879_v49 }
0x176d   :  { %v961_v44 = vpop.permute.xlu0 %960 }
0x176e   :  { %v963_v45 = vmul.f32 %v1935_v43, %v961_v44 }
0x1770   :  { %965 = vrot.lane.b32.xlu1 %v963_v45, %s1998_s18 }
0x17e2   :  { %v966_v51 = vpop.permute.xlu1 %965 }
0x17e3   :  { %v968_v15 = vadd.f32 %v966_v51, %v958_v46 }
0x17e5   :  { %1936 = vtanh.f32 %v968_v15 }
0x17ef   :  { %v1937_v52 = vpop.eup %1936 }
0x17f0   :  { %971 = vrot.lane.b32.xlu0 %v1937_v52, %s1997_s1 }
0x1862   :  { %v972_v53 = vpop.permute.xlu0 %971 }
0x1863   :  { %v974_v54 = vmul.f32 %v1935_v43, %v972_v53 }
0x1865   :  { %v2244_v55 = vpack.c.bf16 %v974_v54, %v974_v54 }
0x1867   :  { %986 = vrot.lane.b32.xlu1 %v2244_v55, %s1998_s18 }
0x18d9   :  { %v987_v56 = vpop.permute.xlu1 %986 }
0x18da   :  { %1794 = vmatmul.mubr.msk.bf16.vlgmr.msra.gmra.mrb[24].mxu1 %vm68_vm0, %v987_v56 }
0x18db   :  { %1806 = vmatpush3.bf16.msra.mxu1 %v2216_v31  ;;  %1809 = vmatprep.mubr.msk.bf16.mxu1 %vm1995_vm1, %v1994_v7 }
0x18dc   :  { %1807 = vmatprep.subr.bf16.mxu1 %v1994_v7 }
0x18df   :  { %1808 = vmatpush3.bf16.msra.mxu1 %v2222_v32 }
0x18e0   :  { %1821 = vmatprep.subr.bf16.mxu1 %v1994_v7 }
0x19ad   :  { %v1025_v57 = vpop.f32.mrb[24].mxu1 }
0x19ae   :  { %v1031_v20 = vadd.f32 %v1025_v57, %v2104_v17  ;;  %v1795_v58 = vpop.f32.mrb[25].mxu1 }
0x19af   :  { %v1028_v59 = vpop.f32.mrb[26].mxu1 }
0x19b0   :  { %1938 = vtanh.f32 %v1031_v20  ;;  %v1796_v60 = vpop.f32.mrb[27].mxu1  ;;  %v1598_v62 = vmul.f32 -1.442695, %v1031_v20 }
0x19b2   :  { %1940 = vpow2.f32 %v1598_v62 }
0x19ba   :  { %v1939_v61 = vpop.eup %1938 }
0x19bb   :  { %1041 = vrot.lane.b32.xlu0 %v1939_v61, %s1997_s1 }
0x19bc   :  { %v1941_v63 = vpop.eup %1940 }
0x19bd   :  { %v1035_v47 = vadd.f32 1.0, %v1941_v63 }
0x19bf   :  { %1942 = vrcp.f32 %v1035_v47 }
0x19c9   :  { %v1943_v0 = vpop.eup %1942 }
0x19ca   :  { %v1039_v3 = vmul.f32 %v1943_v0, %v968_v15 }
0x1a2d   :  { %v1042_v1 = vpop.permute.xlu0 %1041 }
0x1a2e   :  { %v1044_v2 = vmul.f32 %v1943_v0, %v1042_v1 }
0x1a30   :  { %1046 = vrot.lane.b32.xlu1 %v1044_v2, %s1998_s18 }
0x1aa2   :  { %v1047_v4 = vpop.permute.xlu1 %1046 }
0x1aa3   :  { %v1049_v17 = vadd.f32 %v1047_v4, %v1039_v3 }
0x1aa5   :  { %1944 = vtanh.f32 %v1049_v17 }
0x1aaf   :  { %v1945_v6 = vpop.eup %1944 }
0x1ab0   :  { %1052 = vrot.lane.b32.xlu0 %v1945_v6, %s1997_s1 }
0x1b22   :  { %v1053_v8 = vpop.permute.xlu0 %1052 }
0x1b23   :  { %v1055_v10 = vmul.f32 %v1943_v0, %v1053_v8 }
0x1b25   :  { %v2259_v11 = vpack.c.bf16 %v1055_v10, %v1055_v10 }
0x1b27   :  { %1067 = vrot.lane.b32.xlu1 %v2259_v11, %s1998_s18 }
0x1b99   :  { %v1068_v12 = vpop.permute.xlu1 %1067 }
0x1b9a   :  { %1802 = vmatmul.mubr.msk.bf16.vlgmr.msra.gmra.mrb[28].mxu0 %vm68_vm0, %v1068_v12 }
0x1b9b   :  { %1814 = vmatpush3.bf16.msra.mxu0 %v2216_v31  ;;  %1817 = vmatprep.mubr.msk.bf16.mxu0 %vm1995_vm1, %v1994_v7 }
0x1b9c   :  { %1815 = vmatprep.subr.bf16.mxu0 %v1994_v7 }
0x1b9f   :  { %1816 = vmatpush3.bf16.msra.mxu0 %v2222_v32 }
0x1ba0   :  { %1829 = vmatprep.subr.bf16.mxu0 %v1994_v7 }
0x1c6d   :  { %v1106_v13 = vpop.f32.mrb[28].mxu0 }
0x1c6e   :  { %v1112_v19 = vadd.f32 %v2098_v14, %v1106_v13  ;;  %v1803_v22 = vpop.f32.mrb[29].mxu0 }
0x1c6f   :  { %v1109_v48 = vpop.f32.mrb[30].mxu0 }
0x1c70   :  { %1946 = vtanh.f32 %v1112_v19  ;;  %v1804_v26 = vpop.f32.mrb[31].mxu0  ;;  %v1602_v28 = vmul.f32 -1.442695, %v1112_v19 }
0x1c72   :  { %1948 = vpow2.f32 %v1602_v28 }
0x1c7a   :  { %v1947_v27 = vpop.eup %1946 }
0x1c7b   :  { %1122 = vrot.lane.b32.xlu0 %v1947_v27, %s1997_s1 }
0x1c7c   :  { %v1949_v29 = vpop.eup %1948 }
0x1c7d   :  { %v1116_v30 = vadd.f32 1.0, %v1949_v29 }
0x1c7f   :  { %1950 = vrcp.f32 %v1116_v30 }
0x1c89   :  { %v1951_v49 = vpop.eup %1950 }
0x1c8a   :  { %v1120_v18 = vmul.f32 %v1951_v49, %v1049_v17 }
0x1ced   :  { %v1123_v33 = vpop.permute.xlu0 %1122 }
0x1cee   :  { %v1125_v34 = vmul.f32 %v1951_v49, %v1123_v33 }
0x1cf0   :  { %1127 = vrot.lane.b32.xlu1 %v1125_v34, %s1998_s18 }
0x1d62   :  { %v1128_v35 = vpop.permute.xlu1 %1127 }
0x1d63   :  { %v1130_v14 = vadd.f32 %v1128_v35, %v1120_v18 }
0x1d65   :  { %1952 = vtanh.f32 %v1130_v14 }
0x1d6f   :  { %v1953_v5 = vpop.eup %1952 }
0x1d70   :  { %1133 = vrot.lane.b32.xlu0 %v1953_v5, %s1997_s1 }
0x1de2   :  { %v1134_v36 = vpop.permute.xlu0 %1133 }
0x1de3   :  { %v1136_v37 = vmul.f32 %v1951_v49, %v1134_v36 }
0x1de5   :  { %v2274_v38 = vpack.c.bf16 %v1136_v37, %v1136_v37 }
0x1de7   :  { %1148 = vrot.lane.b32.xlu1 %v2274_v38, %s1998_s18 }
0x1e59   :  { %v1149_v39 = vpop.permute.xlu1 %1148 }
0x1e5a   :  { %1810 = vmatmul.mubr.msk.bf16.vlgmr.msra.gmra.mrb[28].mxu1 %vm68_vm0, %v1149_v39 }
0x1e5b   :  { %1822 = vmatpush3.bf16.msra.mxu1 %v2216_v31  ;;  %1825 = vmatprep.mubr.msk.bf16.mxu1 %vm1995_vm1, %v1994_v7 }
0x1e5c   :  { %1823 = vmatprep.subr.bf16.mxu1 %v1994_v7 }
0x1e5f   :  { %1824 = vmatpush3.bf16.msra.mxu1 %v2222_v32 }
0x1e60   :  { %1837 = vmatprep.subr.bf16.mxu1 %v1994_v7 }
0x1f2d   :  { %v1187_v9 = vpop.f32.mrb[28].mxu1 }
0x1f2e   :  { %v1193_v40 = vadd.f32 %v2102_v16, %v1187_v9  ;;  %v1811_v41 = vpop.f32.mrb[29].mxu1 }
0x1f2f   :  { %v1190_v50 = vpop.f32.mrb[30].mxu1 }
0x1f30   :  { %1954 = vtanh.f32 %v1193_v40  ;;  %v1812_v42 = vpop.f32.mrb[31].mxu1  ;;  %v1606_v44 = vmul.f32 -1.442695, %v1193_v40 }
0x1f32   :  { %1956 = vpow2.f32 %v1606_v44 }
0x1f3a   :  { %v1955_v43 = vpop.eup %1954 }
0x1f3b   :  { %1203 = vrot.lane.b32.xlu0 %v1955_v43, %s1997_s1 }
0x1f3c   :  { %v1957_v45 = vpop.eup %1956 }
0x1f3d   :  { %v1197_v46 = vadd.f32 1.0, %v1957_v45 }
0x1f3f   :  { %1958 = vrcp.f32 %v1197_v46 }
0x1f49   :  { %v1959_v51 = vpop.eup %1958 }
0x1f4a   :  { %v1201_v53 = vmul.f32 %v1959_v51, %v1130_v14 }
0x1fad   :  { %v1204_v15 = vpop.permute.xlu0 %1203 }
0x1fae   :  { %v1206_v52 = vmul.f32 %v1959_v51, %v1204_v15 }
0x1fb0   :  { %1208 = vrot.lane.b32.xlu1 %v1206_v52, %s1998_s18 }
0x2022   :  { %v1209_v54 = vpop.permute.xlu1 %1208 }
0x2023   :  { %v1211_v16 = vadd.f32 %v1209_v54, %v1201_v53 }
0x2025   :  { %1960 = vtanh.f32 %v1211_v16 }
0x202f   :  { %v1961_v56 = vpop.eup %1960 }
0x2030   :  { %1214 = vrot.lane.b32.xlu0 %v1961_v56, %s1997_s1 }
0x20a2   :  { %v1215_v57 = vpop.permute.xlu0 %1214 }
0x20a3   :  { %v1217_v20 = vmul.f32 %v1959_v51, %v1215_v57 }
0x20a5   :  { %v2289_v58 = vpack.c.bf16 %v1217_v20, %v1217_v20 }
0x20a7   :  { %1229 = vrot.lane.b32.xlu1 %v2289_v58, %s1998_s18 }
0x2119   :  { %v1230_v59 = vpop.permute.xlu1 %1229 }
0x211a   :  { %1818 = vmatmul.mubr.msk.bf16.vlgmr.msra.gmra.mrb[32].mxu0 %vm68_vm0, %v1230_v59 }
0x211b   :  { %1830 = vmatpush3.bf16.msra.mxu0 %v2216_v31  ;;  %1833 = vmatprep.mubr.msk.bf16.mxu0 %vm1995_vm1, %v1994_v7 }
0x211c   :  { %1831 = vmatprep.subr.bf16.mxu0 %v1994_v7 }
0x211f   :  { %1832 = vmatpush3.bf16.msra.mxu0 %v2222_v32 }
0x21ed   :  { %v1268_v60 = vpop.f32.mrb[32].mxu0 }
0x21ee   :  { %v1274_v61 = vadd.f32 %v1268_v60, %v2112_v23  ;;  %v1819_v62 = vpop.f32.mrb[33].mxu0 }
0x21ef   :  { %v1271_v63 = vpop.f32.mrb[34].mxu0 }
0x21f0   :  { %1962 = vtanh.f32 %v1274_v61  ;;  %v1820_v47 = vpop.f32.mrb[35].mxu0  ;;  %v1610_v1 = vmul.f32 -1.442695, %v1274_v61 }
0x21f2   :  { %1964 = vpow2.f32 %v1610_v1 }
0x21fa   :  { %v1963_v0 = vpop.eup %1962 }
0x21fb   :  { %1284 = vrot.lane.b32.xlu0 %v1963_v0, %s1997_s1 }
0x21fc   :  { %v1965_v2 = vpop.eup %1964 }
0x21fd   :  { %v1278_v3 = vadd.f32 1.0, %v1965_v2 }
0x21ff   :  { %1966 = vrcp.f32 %v1278_v3 }
0x2209   :  { %v1967_v4 = vpop.eup %1966 }
0x220a   :  { %v1282_v8 = vmul.f32 %v1967_v4, %v1211_v16 }
0x226d   :  { %v1285_v17 = vpop.permute.xlu0 %1284 }
0x226e   :  { %v1287_v6 = vmul.f32 %v1967_v4, %v1285_v17 }
0x2270   :  { %1289 = vrot.lane.b32.xlu1 %v1287_v6, %s1998_s18 }
0x22e2   :  { %v1290_v10 = vpop.permute.xlu1 %1289 }
0x22e3   :  { %v1292_v23 = vadd.f32 %v1290_v10, %v1282_v8 }
0x22e5   :  { %1968 = vtanh.f32 %v1292_v23 }
0x22ef   :  { %v1969_v12 = vpop.eup %1968 }
0x22f0   :  { %1295 = vrot.lane.b32.xlu0 %v1969_v12, %s1997_s1 }
0x2362   :  { %v1296_v13 = vpop.permute.xlu0 %1295 }
0x2363   :  { %v1298_v19 = vmul.f32 %v1967_v4, %v1296_v13 }
0x2365   :  { %v2303_v22 = vpack.c.bf16 %v1298_v19, %v1298_v19 }
0x2367   :  { %1310 = vrot.lane.b32.xlu1 %v2303_v22, %s1998_s18 }
0x23d9   :  { %v1311_v48 = vpop.permute.xlu1 %1310 }
0x23da   :  { %1826 = vmatmul.mubr.msk.bf16.vlgmr.msra.gmra.mrb[32].mxu1 %vm68_vm0, %v1311_v48 }
0x23db   :  { %1838 = vmatpush3.bf16.msra.mxu1 %v2216_v31  ;;  %1841 = vmatprep.mubr.msk.bf16.mxu1 %vm1995_vm1, %v1994_v7 }
0x23dc   :  { %1839 = vmatprep.subr.bf16.mxu1 %v1994_v7 }
0x23df   :  { %1840 = vmatpush3.bf16.msra.mxu1 %v2222_v32 }
0x24ad   :  { %v1349_v26 = vpop.f32.mrb[32].mxu1 }
0x24ae   :  { %v1355_v27 = vadd.f32 %v1349_v26, %v2116_v25  ;;  %v1827_v28 = vpop.f32.mrb[33].mxu1 }
0x24af   :  { %v1352_v29 = vpop.f32.mrb[34].mxu1 }
0x24b0   :  { %1970 = vtanh.f32 %v1355_v27  ;;  %v1828_v30 = vpop.f32.mrb[35].mxu1  ;;  %v1614_v33 = vmul.f32 -1.442695, %v1355_v27 }
0x24b2   :  { %1972 = vpow2.f32 %v1614_v33 }
0x24ba   :  { %v1971_v49 = vpop.eup %1970 }
0x24bb   :  { %1365 = vrot.lane.b32.xlu0 %v1971_v49, %s1997_s1 }
0x24bc   :  { %v1973_v31 = vpop.eup %1972 }
0x24bd   :  { %v1359_v34 = vadd.f32 1.0, %v1973_v31 }
0x24bf   :  { %1974 = vrcp.f32 %v1359_v34 }
0x24c9   :  { %v1975_v18 = vpop.eup %1974 }
0x24ca   :  { %v1363_v32 = vmul.f32 %v1975_v18, %v1292_v23 }
0x252d   :  { %v1366_v35 = vpop.permute.xlu0 %1365 }
0x252e   :  { %v1368_v7 = vmul.f32 %v1975_v18, %v1366_v35 }
0x2530   :  { %1370 = vrot.lane.b32.xlu1 %v1368_v7, %s1998_s18 }
0x25a2   :  { %v1371_v14 = vpop.permute.xlu1 %1370 }
0x25a3   :  { %v1373_v25 = vadd.f32 %v1371_v14, %v1363_v32 }
0x25a5   :  { %1976 = vtanh.f32 %v1373_v25 }
0x25af   :  { %v1977_v5 = vpop.eup %1976 }
0x25b0   :  { %1376 = vrot.lane.b32.xlu0 %v1977_v5, %s1997_s1 }
0x2622   :  { %v1377_v36 = vpop.permute.xlu0 %1376 }
0x2623   :  { %v1379_v37 = vmul.f32 %v1975_v18, %v1377_v36 }
0x2625   :  { %v2317_v39 = vpack.c.bf16 %v1379_v37, %v1379_v37 }
0x2627   :  { %1391 = vrot.lane.b32.xlu1 %v2317_v39, %s1998_s18 }
0x2699   :  { %v1392_v9 = vpop.permute.xlu1 %1391 }
0x269a   :  { %1834 = vmatmul.mubr.msk.bf16.vlgmr.msra.gmra.mrb[36].mxu0 %vm68_vm0, %v1392_v9 }
0x276d   :  { %v1430_v40 = vpop.f32.mrb[36].mxu0 }
0x276e   :  { %v1436_v41 = vadd.f32 %v2110_v21, %v1430_v40  ;;  %v1835_v50 = vpop.f32.mrb[37].mxu0 }
0x276f   :  { %v1433_v42 = vpop.f32.mrb[38].mxu0 }
0x2770   :  { %1978 = vtanh.f32 %v1436_v41  ;;  %v1836_v43 = vpop.f32.mrb[39].mxu0  ;;  %v1618_v45 = vmul.f32 -1.442695, %v1436_v41 }
0x2772   :  { %1980 = vpow2.f32 %v1618_v45 }
0x277a   :  { %v1979_v44 = vpop.eup %1978 }
0x277b   :  { %1446 = vrot.lane.b32.xlu0 %v1979_v44, %s1997_s1 }
0x277c   :  { %v1981_v46 = vpop.eup %1980 }
0x277d   :  { %v1440_v51 = vadd.f32 1.0, %v1981_v46 }
0x277f   :  { %1982 = vrcp.f32 %v1440_v51 }
0x2789   :  { %v1983_v15 = vpop.eup %1982 }
0x278a   :  { %v1444_v54 = vmul.f32 %v1983_v15, %v1373_v25 }
0x27ed   :  { %v1447_v52 = vpop.permute.xlu0 %1446 }
0x27ee   :  { %v1449_v53 = vmul.f32 %v1983_v15, %v1447_v52 }
0x27f0   :  { %1451 = vrot.lane.b32.xlu1 %v1449_v53, %s1998_s18 }
0x2862   :  { %v1452_v16 = vpop.permute.xlu1 %1451 }
0x2863   :  { %v1454_v21 = vadd.f32 %v1452_v16, %v1444_v54 }
0x2865   :  { %1984 = vtanh.f32 %v1454_v21 }
0x286f   :  { %v1985_v56 = vpop.eup %1984 }
0x2870   :  { %1457 = vrot.lane.b32.xlu0 %v1985_v56, %s1997_s1 }
0x28e2   :  { %v1458_v57 = vpop.permute.xlu0 %1457 }
0x28e3   :  { %v1460_v20 = vmul.f32 %v1983_v15, %v1458_v57 }
0x28e5   :  { %v1461_v59 = vpack.c.bf16 %v1460_v20, %v1460_v20 }
0x28e7   :  { %1472 = vrot.lane.b32.xlu1 %v1461_v59, %s1998_s18 }
0x2959   :  { %v1473_v60 = vpop.permute.xlu1 %1472 }
0x295a   :  { %1842 = vmatmul.mubr.msk.bf16.vlgmr.msra.gmra.mrb[36].mxu1 %vm68_vm0, %v1473_v60 }
0x2a2d   :  { %v1511_v61 = vpop.f32.mrb[36].mxu1 }
0x2a2e   :  { %v1517_v62 = vadd.f32 %v2114_v24, %v1511_v61  ;;  %v1843_v63 = vpop.f32.mrb[37].mxu1 }
0x2a2f   :  { %v1514_v47 = vpop.f32.mrb[38].mxu1 }
0x2a30   :  { %1986 = vtanh.f32 %v1517_v62  ;;  %v1844_v0 = vpop.f32.mrb[39].mxu1  ;;  %v1622_v2 = vmul.f32 -1.442695, %v1517_v62 }
0x2a32   :  { %1988 = vpow2.f32 %v1622_v2 }
0x2a3a   :  { %v1987_v1 = vpop.eup %1986 }
0x2a3b   :  { %1527 = vrot.lane.b32.xlu0 %v1987_v1, %s1997_s1 }
0x2a3c   :  { %v1989_v3 = vpop.eup %1988 }
0x2a3d   :  { %v1521_v4 = vadd.f32 1.0, %v1989_v3 }
0x2a3f   :  { %1990 = vrcp.f32 %v1521_v4 }
0x2a49   :  { %v1991_v17 = vpop.eup %1990 }
0x2a4a   :  { %v1525_v24 = vmul.f32 %v1991_v17, %v1454_v21 }
0x2aad   :  { %v1528_v6 = vpop.permute.xlu0 %1527 }
0x2aae   :  { %v1530_v8 = vmul.f32 %v1991_v17, %v1528_v6 }
0x2ab0   :  { %1532 = vrot.lane.b32.xlu1 %v1530_v8, %s1998_s18 }
0x2ab4   :  { %979 = vrot.lane.b32.xlu1 %v2244_v55, %s1998_s18 }
0x2ab8   :  { %1141 = vrot.lane.b32.xlu1 %v2274_v38, %s1998_s18 }
0x2abc   :  { %1303 = vrot.lane.b32.xlu1 %v2303_v22, %s1998_s18 }
0x2ac0   :  { %1465 = vrot.lane.b32.xlu1 %v1461_v59, %s1998_s18 }
0x2b22   :  { %v1533_v10 = vpop.permute.xlu1 %1532 }
0x2b23   :  { %v1535_v23 = vadd.f32 %v1533_v10, %v1525_v24 }
0x2b25   :  { %1992 = vtanh.f32 %v1535_v23 }
0x2b26   :  { %v980_v12 = vpop.permute.xlu1 %979 }
0x2b27   :  { %983 = vst.msk [vmem:[%s2384_s6] sm:$0xf] %vm982_vm2, %v980_v12 }
0x2b2a   :  { %v1142_v55 = vpop.permute.xlu1 %1141 }
0x2b2b   :  { %1604 = vst.msk [vmem:[%s2384_s6 + $0x8] sm:$0xf] %vm982_vm2, %v1142_v55 }
0x2b2e   :  { %v1304_v38 = vpop.permute.xlu1 %1303 }
0x2b2f   :  { %v1993_v13 = vpop.eup %1992  ;;  %1612 = vst.msk [vmem:[%s2384_s6 + $0x10] sm:$0xf] %vm982_vm2, %v1304_v38 }
0x2b30   :  { %1538 = vrot.lane.b32.xlu0 %v1993_v13, %s1997_s1 }
0x2b32   :  { %v1466_v19 = vpop.permute.xlu1 %1465 }
0x2b33   :  { %1620 = vst.msk [vmem:[%s2384_s6 + $0x18] sm:$0xf] %vm982_vm2, %v1466_v19 }
0x2b34   :  { %1060 = vrot.lane.b32.xlu0 %v2259_v11, %s1998_s18 }
0x2b38   :  { %1222 = vrot.lane.b32.xlu0 %v2289_v58, %s1998_s18 }
0x2b3c   :  { %1384 = vrot.lane.b32.xlu0 %v2317_v39, %s1998_s18 }
0x2ba2   :  { %v1539_v22 = vpop.permute.xlu0 %1538 }
0x2ba3   :  { %v1541_v48 = vmul.f32 %v1991_v17, %v1539_v22 }
0x2ba5   :  { %v1632_v26 = vpack.c.bf16 %v1541_v48, %v1541_v48 }
0x2ba6   :  { %v1061_v27 = vpop.permute.xlu0 %1060 }
0x2ba7   :  { %1600 = vst.msk [vmem:[%s2384_s6 + $0x4] sm:$0xf] %vm982_vm2, %v1061_v27  ;;  %1546 = vrot.lane.b32.xlu0 %v1632_v26, %s1998_s18 }
0x2baa   :  { %v1223_v28 = vpop.permute.xlu0 %1222 }
0x2bab   :  { %1608 = vst.msk [vmem:[%s2384_s6 + $0xc] sm:$0xf] %vm982_vm2, %v1223_v28 }
0x2bae   :  { %v1385_v11 = vpop.permute.xlu0 %1384 }
0x2baf   :  { %1616 = vst.msk [vmem:[%s2384_s6 + $0x14] sm:$0xf] %vm982_vm2, %v1385_v11 }
0x2c19   :  { %v1547_v58 = vpop.permute.xlu0 %1546 }
0x2c1a   :  { %1624 = vst.msk [vmem:[%s2384_s6 + $0x1c] sm:$0xf] %vm982_vm2, %v1547_v58 }

</bundles_post_ra>
